<compile_context>
chip_gen: v6e
topology: v6e:2x2x1
jax: 0.10.0
libtpu: 0.0.40
codegen_flags: <defaults>
</compile_context>

<pallas_src>
import functools

import jax
import jax.numpy as jnp
from jax.experimental import pallas as pl
from jax.experimental.pallas import tpu as pltpu


def _round_up(x, m):
    return (x + m - 1) // m * m


def _largest_divisor_leq(n, target):
    t = max(1, min(target, n))
    while t > 1 and n % t:
        t -= 1
    return t


def _largest_tile(n, target, mult):
    """Largest multiple of `mult` dividing `n` (n % mult == 0) that is <= target."""
    t = max(mult, min(target, n))
    t -= t % mult
    while t > mult and n % t:
        t -= mult
    return t


def _device_info():
    """(num_tensorcores, vmem_limit_bytes) -- conservative, string-based detection."""
    try:
        kind = jax.devices()[0].device_kind.lower()
    except Exception:
        kind = ""
    is_v7 = "v7" in kind
    known_big_vmem = any(("v%d" % g) in kind for g in (2, 3, 4, 5, 6))
    num_tc = 2 if is_v7 else 1
    if is_v7:
        vmem_limit = 48 * 1024 * 1024        # 64 MiB physical on v7x
    elif known_big_vmem:
        vmem_limit = 100 * 1024 * 1024       # 128 MiB physical on v5e/v6e
    else:
        vmem_limit = 64 * 1024 * 1024
    return num_tc, vmem_limit


# -----------------------------------------------------------------------------
# Kernel 1: sequential LSTM recurrence over one (batch-tile, time-chunk).
#   grid = (batch_tiles, time_chunks); time is 'arbitrary' (sequential),
#   batch tiles are 'parallel'.  h/c scratch carry state across time chunks and
#   are re-initialised whenever the time index wraps to 0 (new batch tile).
#   Gate column order is [i, f, o, g] (repacked at param-prep time).
# -----------------------------------------------------------------------------
def lstm_recurrent_kernel(xg_ref, whh_ref, h_out_ref, h_sc, c_sc):
    @pl.when(pl.program_id(1) == 0)
    def _():
        h_sc[...] = jnp.zeros_like(h_sc)
        c_sc[...] = jnp.zeros_like(c_sc)

    hdim = h_sc.shape[1]
    n_steps = xg_ref.shape[0]  # static chunk length

    def step(t, carry):
        # bf16 pre-gates (bias already folded) + bf16 recurrent matmul, f32 acc.
        gates = xg_ref[t].astype(jnp.float32) + jnp.dot(
            h_sc[...], whh_ref[...], preferred_element_type=jnp.float32)  # (Bt, 4H)
        sig = jax.nn.sigmoid(gates[:, :3 * hdim])       # one wide sigmoid: [i | f | o]
        i_g = sig[:, :hdim]
        f_g = sig[:, hdim:2 * hdim]
        o_g = sig[:, 2 * hdim:]
        g_g = jnp.tanh(gates[:, 3 * hdim:])
        c_new = f_g * c_sc[...] + i_g * g_g
        h_new = o_g * jnp.tanh(c_new)
        c_sc[...] = c_new
        h_sc[...] = h_new.astype(h_sc.dtype)            # bf16 state for next matmul
        h_out_ref[t] = h_new                            # f32, dense (Bt, H) store
        return carry

    jax.lax.fori_loop(0, n_steps, step, 0, unroll=min(8, n_steps))


# -----------------------------------------------------------------------------
# Kernel 2: vocab projection logits = h @ W_out^T + b, written batch-major.
#   grid = (vocab_blocks, batch, time_blocks); vocab is outermost so each
#   W_out block is DMA'd once; h (H-wide) is the tensor that gets re-streamed.
# -----------------------------------------------------------------------------
def out_proj_kernel(h_ref, w_ref, b_ref, o_ref):
    o_ref[...] = (jnp.dot(h_ref[...].astype(w_ref.dtype), w_ref[...],
                          preferred_element_type=jnp.float32)
                  + b_ref[...])


def decoder_lstm_forward(features, captions, params, *, time_chunk=32):
    """features: (B, E) f32, captions: (B, T) int32 -> logits (B, T, V) f32."""
    emb_w = params["embedding"]          # (V, E)
    w_ih_t = params["w_ih_t"]            # (2E, 4H)   gate order [i, f, g, o]
    w_hh_t = params["w_hh_t"]            # (H, 4H)
    b_lstm = params["b_lstm"]            # (1, 4H) = b_ih + b_hh
    w_out_t = params["w_out_t"]          # (H, V)
    b_out = params["b_out"]              # (1, V)

    B, T = captions.shape
    E = emb_w.shape[1]
    H = w_hh_t.shape[0]
    V = w_out_t.shape[1]

    num_tc, vmem_limit = _device_info()
    vmem_budget = int(0.75 * vmem_limit)

    # ---- padded sizes (lane-dense H/V, sublane-dense B/T) ----
    H_pad = _round_up(H, 128)
    V_pad = _round_up(V, 128)
    B_pad = _round_up(B, 8)
    Tc = min(_round_up(time_chunk, 8), _round_up(T, 8))

    # Batch tile: split only when a second TensorCore exists and tiles stay big.
    Bt = B_pad
    if num_tc >= 2 and B_pad % 16 == 0 and B_pad // 2 >= 32:
        Bt = B_pad // 2

    # Shrink the time chunk until the recurrence working set fits the VMEM budget.
    def _rec_vmem(tc):
        return (2 * tc * Bt * 4 * H_pad * 2      # xg blocks  (bf16, double-buffered)
                + 2 * tc * Bt * H_pad * 4        # h_out blocks (f32, double-buffered)
                + 2 * H_pad * 4 * H_pad * 2      # W_hh (bf16, double-buffered)
                + Bt * H_pad * (2 + 4))          # h/c scratch
    while Tc > 8 and _rec_vmem(Tc) > vmem_budget:
        Tc = max(8, (Tc // 2) // 8 * 8)
    T_pad = _round_up(T, Tc)

    # ---- weight prep: repack gates [i,f,g,o]->[i,f,o,g], zero-pad H -> H_pad ----
    def repack(m, axis):
        i_b, f_b, g_b, o_b = jnp.split(m, 4, axis=axis)
        pad = [(0, 0)] * m.ndim
        pad[axis] = (0, H_pad - H)
        padf = lambda a: jnp.pad(a, pad)
        return jnp.concatenate([padf(i_b), padf(f_b), padf(o_b), padf(g_b)], axis=axis)

    w_ih_p = repack(w_ih_t, 1).astype(jnp.bfloat16)                       # (2E, 4H_pad)
    w_hh_p = jnp.pad(repack(w_hh_t, 1),
                     ((0, H_pad - H), (0, 0))).astype(jnp.bfloat16)       # (H_pad, 4H_pad)
    b_lstm_p = repack(b_lstm, 1).astype(jnp.float32)                      # (1, 4H_pad)
    w_out_p = jnp.pad(w_out_t,
                      ((0, H_pad - H), (0, V_pad - V))).astype(jnp.bfloat16)  # (H_pad, V_pad)
    b_out_p = jnp.pad(b_out, ((0, 0), (0, V_pad - V))).astype(jnp.float32)    # (1, V_pad)

    # ---- glue (XLA): shift-right captions, embed, concat image features (time-major) ----
    caps = jnp.pad(captions[:, :-1], ((0, 0), (1, 0)), constant_values=0)         # (B, T)
    caps = jnp.pad(caps, ((0, B_pad - B), (0, T_pad - T)), constant_values=0)     # (B_pad, T_pad)
    embed = jnp.take(emb_w, caps.T, axis=0)                                       # (T_pad, B_pad, E)
    feats = jnp.pad(features, ((0, B_pad - B), (0, 0)))
    feat_tm = jnp.broadcast_to(feats[None, :, :], (T_pad, B_pad, E))
    x = jnp.concatenate([feat_tm, embed], axis=2).astype(jnp.bfloat16)            # (T_pad, B_pad, 2E)

    # ---- hoisted input->gate projection: one big bf16 MXU matmul, bias folded ----
    xg = (jnp.dot(x.reshape(T_pad * B_pad, 2 * E), w_ih_p,
                  preferred_element_type=jnp.float32) + b_lstm_p)                 # f32
    xg = xg.astype(jnp.bfloat16).reshape(T_pad, B_pad, 4 * H_pad)                 # bf16 stream

    # ---- kernel 1: sequential recurrence ----
    h_all = pl.pallas_call(
        lstm_recurrent_kernel,
        out_shape=jax.ShapeDtypeStruct((T_pad, B_pad, H_pad), jnp.float32),
        grid_spec=pltpu.PrefetchScalarGridSpec(
            num_scalar_prefetch=0,
            grid=(B_pad // Bt, T_pad // Tc),
            in_specs=[
                pl.BlockSpec((Tc, Bt, 4 * H_pad), lambda b, t: (t, b, 0)),  # pre-gates (bf16)
                pl.BlockSpec((H_pad, 4 * H_pad), lambda b, t: (0, 0)),      # W_hh^T (bf16)
            ],
            out_specs=pl.BlockSpec((Tc, Bt, H_pad), lambda b, t: (t, b, 0)),
            scratch_shapes=[
                pltpu.VMEM((Bt, H_pad), jnp.bfloat16),   # h state (bf16: matmul operand)
                pltpu.VMEM((Bt, H_pad), jnp.float32),    # c state
            ],
        ),
        compiler_params=pltpu.CompilerParams(
            dimension_semantics=("parallel", "arbitrary"),
            vmem_limit_bytes=vmem_limit),
    )(xg, w_hh_p)

    # ---- kernel 2: vocab projection, batch-major logits (no transposes) ----
    h2d = h_all.reshape(T_pad, B_pad * H_pad)          # contiguous minor-dim merge: free
    Tt = _largest_divisor_leq(T_pad, 256)              # rows per matmul (one batch row)
    v_tile = _largest_tile(V_pad, 2048 if num_tc == 1 else 1024, 128)

    def _proj_vmem(vt):
        return 2 * (Tt * H_pad * 4 + H_pad * vt * 2 + vt * 4 + Tt * vt * 4)
    while v_tile > 128 and _proj_vmem(v_tile) > vmem_budget:
        v_tile = _largest_tile(V_pad, v_tile - 128, 128)

    nV = V_pad // v_tile
    nTb = T_pad // Tt

    logits2d = pl.pallas_call(
        out_proj_kernel,
        out_shape=jax.ShapeDtypeStruct((B_pad * T_pad, V_pad), jnp.float32),
        grid_spec=pltpu.PrefetchScalarGridSpec(
            num_scalar_prefetch=0,
            grid=(nV, B_pad, nTb),   # vocab outermost: each W_out block DMA'd once
            in_specs=[
                pl.BlockSpec((Tt, H_pad), lambda j, b, t: (t, b)),      # h rows of batch b
                pl.BlockSpec((H_pad, v_tile), lambda j, b, t: (0, j)),  # W_out^T (bf16)
                pl.BlockSpec((1, v_tile), lambda j, b, t: (0, j)),      # bias
            ],
            out_specs=pl.BlockSpec((Tt, v_tile),
                                   lambda j, b, t: (b * nTb + t, j)),   # batch-major rows
        ),
        compiler_params=pltpu.CompilerParams(
            dimension_semantics=("parallel", "parallel", "parallel"),
            vmem_limit_bytes=vmem_limit),
    )(h2d, w_out_p, b_out_p)

    logits = logits2d.reshape(B_pad, T_pad, V_pad)[:B, :T, :V]    # (B, T, V)
    return logits


def make_params(key, embed_size, hidden_size, vocab_size):
    ks = jax.random.split(key, 7)
    E, H, V = embed_size, hidden_size, vocab_size
    s = 0.1
    emb = jax.random.normal(ks[0], (V, E), jnp.float32) * s
    w_ih = jax.random.normal(ks[1], (4 * H, 2 * E), jnp.float32) * s   # PyTorch shapes
    w_hh = jax.random.normal(ks[2], (4 * H, H), jnp.float32) * s
    b_ih = jax.random.normal(ks[3], (4 * H,), jnp.float32) * s
    b_hh = jax.random.normal(ks[4], (4 * H,), jnp.float32) * s
    w_out = jax.random.normal(ks[5], (V, H), jnp.float32) * s
    b_out = jax.random.normal(ks[6], (V,), jnp.float32) * s
    return {
        "embedding": emb,
        "w_ih_t": w_ih.T,                       # (2E, 4H)
        "w_hh_t": w_hh.T,                       # (H, 4H)
        "b_lstm": (b_ih + b_hh)[None, :],       # (1, 4H)
        "w_out_t": w_out.T,                     # (H, V)
        "b_out": b_out[None, :],                # (1, V)
    }


def reference_forward(features, captions, params, matmul_dtype=jnp.float32,
                      round_xg_to_bf16=False):
    """Pure-JAX reference (lax.scan).  bf16 + round_xg_to_bf16 matches kernel numerics."""
    emb_w = params["embedding"]
    B, T = captions.shape
    E = emb_w.shape[1]
    H = params["w_hh_t"].shape[0]
    cast = lambda a: a.astype(matmul_dtype)

    caps = jnp.pad(captions[:, :-1], ((0, 0), (1, 0)), constant_values=0)
    embed = jnp.take(emb_w, caps, axis=0)
    x = jnp.concatenate(
        [jnp.broadcast_to(features[:, None, :], (B, T, E)), embed], axis=2)
    xg = (jnp.dot(cast(x.reshape(B * T, 2 * E)), cast(params["w_ih_t"]),
                  preferred_element_type=jnp.float32) + params["b_lstm"])
    if round_xg_to_bf16:
        xg = xg.astype(jnp.bfloat16).astype(jnp.float32)
    xg = xg.reshape(B, T, 4 * H).transpose(1, 0, 2)                     # (T, B, 4H)

    def step(carry, g_t):
        h, c = carry
        gates = g_t + jnp.dot(cast(h), cast(params["w_hh_t"]),
                              preferred_element_type=jnp.float32)
        i = jax.nn.sigmoid(gates[:, 0 * H:1 * H])
        f = jax.nn.sigmoid(gates[:, 1 * H:2 * H])
        g = jnp.tanh(gates[:, 2 * H:3 * H])
        o = jax.nn.sigmoid(gates[:, 3 * H:4 * H])
        c = f * c + i * g
        h = o * jnp.tanh(c)
        out = (jnp.dot(cast(h), cast(params["w_out_t"]),
                       preferred_element_type=jnp.float32) + params["b_out"])
        return (h, c), out

    init = (jnp.zeros((B, H), jnp.float32), jnp.zeros((B, H), jnp.float32))
    (_, _), outs = jax.lax.scan(step, init, xg)
    return jnp.transpose(outs, (1, 0, 2))


if __name__ == "__main__":
    B, T = 2, 8
    embed_size, hidden_size, vocab_size = 32, 32, 64

    key = jax.random.PRNGKey(0)
    k_feat, k_cap, k_par = jax.random.split(key, 3)

    features = jax.random.normal(k_feat, (B, embed_size), jnp.float32)
    captions = jax.random.randint(k_cap, (B, T), 0, vocab_size, dtype=jnp.int32)
    params = make_params(k_par, embed_size, hidden_size, vocab_size)

    fwd = jax.jit(functools.partial(decoder_lstm_forward, time_chunk=32))
    out = jax.block_until_ready(fwd(features, captions, params))
    assert out.shape == (B, T, vocab_size)

    # Tight check vs a reference using the same bf16-operand / f32-accumulate math
    # (including the bf16 rounding of the streamed pre-gates).
    ref_bf16 = reference_forward(features, captions, params,
                                 matmul_dtype=jnp.bfloat16, round_xg_to_bf16=True)
    assert jnp.allclose(out, ref_bf16, atol=2e-3, rtol=2e-3), \
        "mismatch vs bf16-matched reference"

    # Loose sanity check vs the full-f32 reference (bf16 operand tolerance).
    ref_f32 = reference_forward(features, captions, params, matmul_dtype=jnp.float32)
    assert jnp.allclose(out, ref_f32, atol=1e-1, rtol=1e-1), \
        "mismatch vs f32 reference"

    print("KERNEL_OK")
</pallas_src>

<mosaic_0001>
module attributes {stable_mosaic.version = 11 : i64} {
  func.func @out_proj_kernel(%arg0: i32, %arg1: i32, %arg2: i32, %arg3: memref<8x128xf32, #tpu.memory_space<vmem>>, %arg4: memref<128x128xbf16, #tpu.memory_space<vmem>>, %arg5: memref<1x128xf32, #tpu.memory_space<vmem>>, %arg6: memref<8x128xf32, #tpu.memory_space<vmem>>) attributes {dimension_semantics = [#tpu.dimension_semantics<parallel>, #tpu.dimension_semantics<parallel>, #tpu.dimension_semantics<parallel>], iteration_bounds = array<i64: 1, 8, 1>, scalar_prefetch = 0 : i64, scratch_operands = 0 : i64, tpu.core_type = #tpu.core_type<tc>, window_params = [{transform_indices = @transform_0, window_bounds = array<i64: 8, 128>}, {transform_indices = @transform_1, window_bounds = array<i64: 128, 128>}, {transform_indices = @transform_2, window_bounds = array<i64: 1, 128>}, {transform_indices = @transform_3, window_bounds = array<i64: 8, 128>}]} {
    %c0 = arith.constant 0 : index
    %c0_0 = arith.constant 0 : index
    %0 = vector.load %arg3[%c0, %c0_0] : memref<8x128xf32, #tpu.memory_space<vmem>>, vector<8x128xf32>
    %1 = arith.truncf %0 : vector<8x128xf32> to vector<8x128xbf16>
    %c0_1 = arith.constant 0 : index
    %c0_2 = arith.constant 0 : index
    %2 = vector.load %arg4[%c0_1, %c0_2] : memref<128x128xbf16, #tpu.memory_space<vmem>>, vector<128x128xbf16>
    %cst = arith.constant dense<0.000000e+00> : vector<8x128xf32>
    %3 = tpu.matmul %1, %2, %cst {dimension_numbers = #tpu.dot_dimension_numbers<[1], [0], [0], [1], [0, 0, 1, 1], [], []>} : vector<8x128xbf16>, vector<128x128xbf16>, vector<8x128xf32> -> vector<8x128xf32>
    %c0_3 = arith.constant 0 : index
    %c0_4 = arith.constant 0 : index
    %4 = vector.load %arg5[%c0_3, %c0_4] : memref<1x128xf32, #tpu.memory_space<vmem>>, vector<1x128xf32>
    %5 = vector.broadcast %4 : vector<1x128xf32> to vector<8x128xf32>
    %6 = arith.addf %3, %5 : vector<8x128xf32>
    %c0_5 = arith.constant 0 : index
    %c0_6 = arith.constant 0 : index
    %7 = vector.load %arg6[%c0_5, %c0_6] : memref<8x128xf32, #tpu.memory_space<vmem>>, vector<8x128xf32>
    tpu.vector_store %arg6[%c0_5, %c0_6], %6 {strides = array<i32>} : memref<8x128xf32, #tpu.memory_space<vmem>>, vector<8x128xf32>,
    return
  }
  func.func @transform_0(%arg0: i32, %arg1: i32, %arg2: i32) -> (i32, i32) {
    %c0_i32 = arith.constant 0 : i32
    return %arg2, %arg1 : i32, i32
  }
  func.func @transform_1(%arg0: i32, %arg1: i32, %arg2: i32) -> (i32, i32) {
    %c0_i32 = arith.constant 0 : i32
    %c0_i32_0 = arith.constant 0 : i32
    return %c0_i32, %arg0 : i32, i32
  }
  func.func @transform_2(%arg0: i32, %arg1: i32, %arg2: i32) -> (i32, i32) {
    %c0_i32 = arith.constant 0 : i32
    %c0_i32_0 = arith.constant 0 : i32
    return %c0_i32, %arg0 : i32, i32
  }
  func.func @transform_3(%arg0: i32, %arg1: i32, %arg2: i32) -> (i32, i32) {
    %c1_i32 = arith.constant 1 : i32
    %0 = arith.muli %arg1, %c1_i32 : i32
    %1 = arith.addi %0, %arg2 : i32
    %c0_i32 = arith.constant 0 : i32
    return %1, %arg0 : i32, i32
  }
}

module attributes {stable_mosaic.version = 11 : i64} {
  func.func @lstm_recurrent_kernel(%arg0: i32, %arg1: i32, %arg2: memref<8x8x512xbf16, #tpu.memory_space<vmem>>, %arg3: memref<128x512xbf16, #tpu.memory_space<vmem>>, %arg4: memref<8x8x128xf32, #tpu.memory_space<vmem>>, %arg5: memref<8x128xbf16, #tpu.memory_space<vmem>>, %arg6: memref<8x128xf32, #tpu.memory_space<vmem>>) attributes {dimension_semantics = [#tpu.dimension_semantics<parallel>, #tpu.dimension_semantics<arbitrary>], iteration_bounds = array<i64: 1, 1>, scalar_prefetch = 0 : i64, scratch_operands = 2 : i64, tpu.core_type = #tpu.core_type<tc>, window_params = [{transform_indices = @transform_0, window_bounds = array<i64: 8, 8, 512>}, {pipeline_mode = #tpu.pipeline_mode<synchronous>, transform_indices = @transform_1, window_bounds = array<i64: 128, 512>}, {transform_indices = @transform_2, window_bounds = array<i64: 8, 8, 128>}]} {
    %c0_i32 = arith.constant 0 : i32
    %0 = arith.cmpi eq, %arg1, %c0_i32 : i32
    %1 = arith.extui %0 : i1 to i32
    %c0_i32_0 = arith.constant 0 : i32
    %2 = arith.cmpi ne, %1, %c0_i32_0 : i32
    scf.if %2 {
      %cst_128 = arith.constant 0.000000e+00 : bf16
      %259 = vector.broadcast %cst_128 : bf16 to vector<8x128xbf16>
      %c0_129 = arith.constant 0 : index
      %c0_130 = arith.constant 0 : index
      %260 = vector.load %arg5[%c0_129, %c0_130] : memref<8x128xbf16, #tpu.memory_space<vmem>>, vector<8x128xbf16>
      tpu.vector_store %arg5[%c0_129, %c0_130], %259 {strides = array<i32>} : memref<8x128xbf16, #tpu.memory_space<vmem>>, vector<8x128xbf16>,
      %cst_131 = arith.constant 0.000000e+00 : f32
      %261 = vector.broadcast %cst_131 : f32 to vector<8x128xf32>
      %c0_132 = arith.constant 0 : index
      %c0_133 = arith.constant 0 : index
      %262 = vector.load %arg6[%c0_132, %c0_133] : memref<8x128xf32, #tpu.memory_space<vmem>>, vector<8x128xf32>
      tpu.vector_store %arg6[%c0_132, %c0_133], %261 {strides = array<i32>} : memref<8x128xf32, #tpu.memory_space<vmem>>, vector<8x128xf32>,
    } else {
    }
    %c0_i32_1 = arith.constant 0 : i32
    %3 = arith.index_cast %c0_i32_1 : i32 to index
    %c0 = arith.constant 0 : index
    %c0_2 = arith.constant 0 : index
    %4 = vector.load %arg2[%3, %c0, %c0_2] : memref<8x8x512xbf16, #tpu.memory_space<vmem>>, vector<1x8x512xbf16>
    %5 = vector.shape_cast %4 : vector<1x8x512xbf16> to vector<8x512xbf16>
    %6 = arith.extf %5 : vector<8x512xbf16> to vector<8x512xf32>
    %c0_3 = arith.constant 0 : index
    %c0_4 = arith.constant 0 : index
    %7 = vector.load %arg5[%c0_3, %c0_4] : memref<8x128xbf16, #tpu.memory_space<vmem>>, vector<8x128xbf16>
    %c0_5 = arith.constant 0 : index
    %c0_6 = arith.constant 0 : index
    %8 = vector.load %arg3[%c0_5, %c0_6] : memref<128x512xbf16, #tpu.memory_space<vmem>>, vector<128x512xbf16>
    %cst = arith.constant dense<0.000000e+00> : vector<8x512xf32>
    %9 = tpu.matmul %7, %8, %cst {dimension_numbers = #tpu.dot_dimension_numbers<[1], [0], [0], [1], [0, 0, 1, 1], [], []>} : vector<8x128xbf16>, vector<128x512xbf16>, vector<8x512xf32> -> vector<8x512xf32>
    %10 = arith.addf %6, %9 : vector<8x512xf32>
    %11 = vector.extract_strided_slice %10 {offsets = [0, 0], sizes = [8, 384], strides = [1, 1]} : vector<8x512xf32> to vector<8x384xf32>
    %12 = arith.negf %11 : vector<8x384xf32>
    %13 = math.exp %12 : vector<8x384xf32>
    %cst_7 = arith.constant 1.000000e+00 : f32
    %14 = vector.broadcast %cst_7 : f32 to vector<8x384xf32>
    %15 = arith.addf %14, %13 : vector<8x384xf32>
    %16 = arith.divf %14, %15 : vector<8x384xf32>
    %17 = vector.extract_strided_slice %16 {offsets = [0, 0], sizes = [8, 128], strides = [1, 1]} : vector<8x384xf32> to vector<8x128xf32>
    %18 = vector.extract_strided_slice %16 {offsets = [0, 128], sizes = [8, 128], strides = [1, 1]} : vector<8x384xf32> to vector<8x128xf32>
    %19 = vector.extract_strided_slice %16 {offsets = [0, 256], sizes = [8, 128], strides = [1, 1]} : vector<8x384xf32> to vector<8x128xf32>
    %20 = vector.extract_strided_slice %10 {offsets = [0, 384], sizes = [8, 128], strides = [1, 1]} : vector<8x512xf32> to vector<8x128xf32>
    %21 = math.tanh %20 : vector<8x128xf32>
    %c0_8 = arith.constant 0 : index
    %c0_9 = arith.constant 0 : index
    %22 = vector.load %arg6[%c0_8, %c0_9] : memref<8x128xf32, #tpu.memory_space<vmem>>, vector<8x128xf32>
    %23 = arith.mulf %18, %22 : vector<8x128xf32>
    %24 = arith.mulf %17, %21 : vector<8x128xf32>
    %25 = arith.addf %23, %24 : vector<8x128xf32>
    %26 = math.tanh %25 : vector<8x128xf32>
    %27 = arith.mulf %19, %26 : vector<8x128xf32>
    %c0_10 = arith.constant 0 : index
    %c0_11 = arith.constant 0 : index
    %28 = vector.load %arg6[%c0_10, %c0_11] : memref<8x128xf32, #tpu.memory_space<vmem>>, vector<8x128xf32>
    tpu.vector_store %arg6[%c0_10, %c0_11], %25 {strides = array<i32>} : memref<8x128xf32, #tpu.memory_space<vmem>>, vector<8x128xf32>,
    %29 = arith.truncf %27 : vector<8x128xf32> to vector<8x128xbf16>
    %c0_12 = arith.constant 0 : index
    %c0_13 = arith.constant 0 : index
    %30 = vector.load %arg5[%c0_12, %c0_13] : memref<8x128xbf16, #tpu.memory_space<vmem>>, vector<8x128xbf16>
    tpu.vector_store %arg5[%c0_12, %c0_13], %29 {strides = array<i32>} : memref<8x128xbf16, #tpu.memory_space<vmem>>, vector<8x128xbf16>,
    %31 = arith.index_cast %c0_i32_1 : i32 to index
    %c0_14 = arith.constant 0 : index
    %c0_15 = arith.constant 0 : index
    %32 = vector.load %arg4[%31, %c0_14, %c0_15] : memref<8x8x128xf32, #tpu.memory_space<vmem>>, vector<1x8x128xf32>
    %33 = vector.shape_cast %32 : vector<1x8x128xf32> to vector<8x128xf32>
    %34 = vector.shape_cast %27 : vector<8x128xf32> to vector<1x8x128xf32>
    tpu.vector_store %arg4[%31, %c0_14, %c0_15], %34 {strides = array<i32>} : memref<8x8x128xf32, #tpu.memory_space<vmem>>, vector<1x8x128xf32>,
    %c1_i32 = arith.constant 1 : i32
    %35 = arith.index_cast %c1_i32 : i32 to index
    %c0_16 = arith.constant 0 : index
    %c0_17 = arith.constant 0 : index
    %36 = vector.load %arg2[%35, %c0_16, %c0_17] : memref<8x8x512xbf16, #tpu.memory_space<vmem>>, vector<1x8x512xbf16>
    %37 = vector.shape_cast %36 : vector<1x8x512xbf16> to vector<8x512xbf16>
    %38 = arith.extf %37 : vector<8x512xbf16> to vector<8x512xf32>
    %c0_18 = arith.constant 0 : index
    %c0_19 = arith.constant 0 : index
    %39 = vector.load %arg5[%c0_18, %c0_19] : memref<8x128xbf16, #tpu.memory_space<vmem>>, vector<8x128xbf16>
    %c0_20 = arith.constant 0 : index
    %c0_21 = arith.constant 0 : index
    %40 = vector.load %arg3[%c0_20, %c0_21] : memref<128x512xbf16, #tpu.memory_space<vmem>>, vector<128x512xbf16>
    %cst_22 = arith.constant dense<0.000000e+00> : vector<8x512xf32>
    %41 = tpu.matmul %39, %40, %cst_22 {dimension_numbers = #tpu.dot_dimension_numbers<[1], [0], [0], [1], [0, 0, 1, 1], [], []>} : vector<8x128xbf16>, vector<128x512xbf16>, vector<8x512xf32> -> vector<8x512xf32>
    %42 = arith.addf %38, %41 : vector<8x512xf32>
    %43 = vector.extract_strided_slice %42 {offsets = [0, 0], sizes = [8, 384], strides = [1, 1]} : vector<8x512xf32> to vector<8x384xf32>
    %44 = arith.negf %43 : vector<8x384xf32>
    %45 = math.exp %44 : vector<8x384xf32>
    %cst_23 = arith.constant 1.000000e+00 : f32
    %46 = vector.broadcast %cst_23 : f32 to vector<8x384xf32>
    %47 = arith.addf %46, %45 : vector<8x384xf32>
    %48 = arith.divf %46, %47 : vector<8x384xf32>
    %49 = vector.extract_strided_slice %48 {offsets = [0, 0], sizes = [8, 128], strides = [1, 1]} : vector<8x384xf32> to vector<8x128xf32>
    %50 = vector.extract_strided_slice %48 {offsets = [0, 128], sizes = [8, 128], strides = [1, 1]} : vector<8x384xf32> to vector<8x128xf32>
    %51 = vector.extract_strided_slice %48 {offsets = [0, 256], sizes = [8, 128], strides = [1, 1]} : vector<8x384xf32> to vector<8x128xf32>
    %52 = vector.extract_strided_slice %42 {offsets = [0, 384], sizes = [8, 128], strides = [1, 1]} : vector<8x512xf32> to vector<8x128xf32>
    %53 = math.tanh %52 : vector<8x128xf32>
    %c0_24 = arith.constant 0 : index
    %c0_25 = arith.constant 0 : index
    %54 = vector.load %arg6[%c0_24, %c0_25] : memref<8x128xf32, #tpu.memory_space<vmem>>, vector<8x128xf32>
    %55 = arith.mulf %50, %54 : vector<8x128xf32>
    %56 = arith.mulf %49, %53 : vector<8x128xf32>
    %57 = arith.addf %55, %56 : vector<8x128xf32>
    %58 = math.tanh %57 : vector<8x128xf32>
    %59 = arith.mulf %51, %58 : vector<8x128xf32>
    %c0_26 = arith.constant 0 : index
    %c0_27 = arith.constant 0 : index
    %60 = vector.load %arg6[%c0_26, %c0_27] : memref<8x128xf32, #tpu.memory_space<vmem>>, vector<8x128xf32>
    tpu.vector_store %arg6[%c0_26, %c0_27], %57 {strides = array<i32>} : memref<8x128xf32, #tpu.memory_space<vmem>>, vector<8x128xf32>,
    %61 = arith.truncf %59 : vector<8x128xf32> to vector<8x128xbf16>
    %c0_28 = arith.constant 0 : index
    %c0_29 = arith.constant 0 : index
    %62 = vector.load %arg5[%c0_28, %c0_29] : memref<8x128xbf16, #tpu.memory_space<vmem>>, vector<8x128xbf16>
    tpu.vector_store %arg5[%c0_28, %c0_29], %61 {strides = array<i32>} : memref<8x128xbf16, #tpu.memory_space<vmem>>, vector<8x128xbf16>,
    %63 = arith.index_cast %c1_i32 : i32 to index
    %c0_30 = arith.constant 0 : index
    %c0_31 = arith.constant 0 : index
    %64 = vector.load %arg4[%63, %c0_30, %c0_31] : memref<8x8x128xf32, #tpu.memory_space<vmem>>, vector<1x8x128xf32>
    %65 = vector.shape_cast %64 : vector<1x8x128xf32> to vector<8x128xf32>
    %66 = vector.shape_cast %59 : vector<8x128xf32> to vector<1x8x128xf32>
    tpu.vector_store %arg4[%63, %c0_30, %c0_31], %66 {strides = array<i32>} : memref<8x8x128xf32, #tpu.memory_space<vmem>>, vector<1x8x128xf32>,
    %c2_i32 = arith.constant 2 : i32
    %67 = arith.index_cast %c2_i32 : i32 to index
    %c0_32 = arith.constant 0 : index
    %c0_33 = arith.constant 0 : index
    %68 = vector.load %arg2[%67, %c0_32, %c0_33] : memref<8x8x512xbf16, #tpu.memory_space<vmem>>, vector<1x8x512xbf16>
    %69 = vector.shape_cast %68 : vector<1x8x512xbf16> to vector<8x512xbf16>
    %70 = arith.extf %69 : vector<8x512xbf16> to vector<8x512xf32>
    %c0_34 = arith.constant 0 : index
    %c0_35 = arith.constant 0 : index
    %71 = vector.load %arg5[%c0_34, %c0_35] : memref<8x128xbf16, #tpu.memory_space<vmem>>, vector<8x128xbf16>
    %c0_36 = arith.constant 0 : index
    %c0_37 = arith.constant 0 : index
    %72 = vector.load %arg3[%c0_36, %c0_37] : memref<128x512xbf16, #tpu.memory_space<vmem>>, vector<128x512xbf16>
    %cst_38 = arith.constant dense<0.000000e+00> : vector<8x512xf32>
    %73 = tpu.matmul %71, %72, %cst_38 {dimension_numbers = #tpu.dot_dimension_numbers<[1], [0], [0], [1], [0, 0, 1, 1], [], []>} : vector<8x128xbf16>, vector<128x512xbf16>, vector<8x512xf32> -> vector<8x512xf32>
    %74 = arith.addf %70, %73 : vector<8x512xf32>
    %75 = vector.extract_strided_slice %74 {offsets = [0, 0], sizes = [8, 384], strides = [1, 1]} : vector<8x512xf32> to vector<8x384xf32>
    %76 = arith.negf %75 : vector<8x384xf32>
    %77 = math.exp %76 : vector<8x384xf32>
    %cst_39 = arith.constant 1.000000e+00 : f32
    %78 = vector.broadcast %cst_39 : f32 to vector<8x384xf32>
    %79 = arith.addf %78, %77 : vector<8x384xf32>
    %80 = arith.divf %78, %79 : vector<8x384xf32>
    %81 = vector.extract_strided_slice %80 {offsets = [0, 0], sizes = [8, 128], strides = [1, 1]} : vector<8x384xf32> to vector<8x128xf32>
    %82 = vector.extract_strided_slice %80 {offsets = [0, 128], sizes = [8, 128], strides = [1, 1]} : vector<8x384xf32> to vector<8x128xf32>
    %83 = vector.extract_strided_slice %80 {offsets = [0, 256], sizes = [8, 128], strides = [1, 1]} : vector<8x384xf32> to vector<8x128xf32>
    %84 = vector.extract_strided_slice %74 {offsets = [0, 384], sizes = [8, 128], strides = [1, 1]} : vector<8x512xf32> to vector<8x128xf32>
    %85 = math.tanh %84 : vector<8x128xf32>
    %c0_40 = arith.constant 0 : index
    %c0_41 = arith.constant 0 : index
    %86 = vector.load %arg6[%c0_40, %c0_41] : memref<8x128xf32, #tpu.memory_space<vmem>>, vector<8x128xf32>
    %87 = arith.mulf %82, %86 : vector<8x128xf32>
    %88 = arith.mulf %81, %85 : vector<8x128xf32>
    %89 = arith.addf %87, %88 : vector<8x128xf32>
    %90 = math.tanh %89 : vector<8x128xf32>
    %91 = arith.mulf %83, %90 : vector<8x128xf32>
    %c0_42 = arith.constant 0 : index
    %c0_43 = arith.constant 0 : index
    %92 = vector.load %arg6[%c0_42, %c0_43] : memref<8x128xf32, #tpu.memory_space<vmem>>, vector<8x128xf32>
    tpu.vector_store %arg6[%c0_42, %c0_43], %89 {strides = array<i32>} : memref<8x128xf32, #tpu.memory_space<vmem>>, vector<8x128xf32>,
    %93 = arith.truncf %91 : vector<8x128xf32> to vector<8x128xbf16>
    %c0_44 = arith.constant 0 : index
    %c0_45 = arith.constant 0 : index
    %94 = vector.load %arg5[%c0_44, %c0_45] : memref<8x128xbf16, #tpu.memory_space<vmem>>, vector<8x128xbf16>
    tpu.vector_store %arg5[%c0_44, %c0_45], %93 {strides = array<i32>} : memref<8x128xbf16, #tpu.memory_space<vmem>>, vector<8x128xbf16>,
    %95 = arith.index_cast %c2_i32 : i32 to index
    %c0_46 = arith.constant 0 : index
    %c0_47 = arith.constant 0 : index
    %96 = vector.load %arg4[%95, %c0_46, %c0_47] : memref<8x8x128xf32, #tpu.memory_space<vmem>>, vector<1x8x128xf32>
    %97 = vector.shape_cast %96 : vector<1x8x128xf32> to vector<8x128xf32>
    %98 = vector.shape_cast %91 : vector<8x128xf32> to vector<1x8x128xf32>
    tpu.vector_store %arg4[%95, %c0_46, %c0_47], %98 {strides = array<i32>} : memref<8x8x128xf32, #tpu.memory_space<vmem>>, vector<1x8x128xf32>,
    %c3_i32 = arith.constant 3 : i32
    %99 = arith.index_cast %c3_i32 : i32 to index
    %c0_48 = arith.constant 0 : index
    %c0_49 = arith.constant 0 : index
    %100 = vector.load %arg2[%99, %c0_48, %c0_49] : memref<8x8x512xbf16, #tpu.memory_space<vmem>>, vector<1x8x512xbf16>
    %101 = vector.shape_cast %100 : vector<1x8x512xbf16> to vector<8x512xbf16>
    %102 = arith.extf %101 : vector<8x512xbf16> to vector<8x512xf32>
    %c0_50 = arith.constant 0 : index
    %c0_51 = arith.constant 0 : index
    %103 = vector.load %arg5[%c0_50, %c0_51] : memref<8x128xbf16, #tpu.memory_space<vmem>>, vector<8x128xbf16>
    %c0_52 = arith.constant 0 : index
    %c0_53 = arith.constant 0 : index
    %104 = vector.load %arg3[%c0_52, %c0_53] : memref<128x512xbf16, #tpu.memory_space<vmem>>, vector<128x512xbf16>
    %cst_54 = arith.constant dense<0.000000e+00> : vector<8x512xf32>
    %105 = tpu.matmul %103, %104, %cst_54 {dimension_numbers = #tpu.dot_dimension_numbers<[1], [0], [0], [1], [0, 0, 1, 1], [], []>} : vector<8x128xbf16>, vector<128x512xbf16>, vector<8x512xf32> -> vector<8x512xf32>
    %106 = arith.addf %102, %105 : vector<8x512xf32>
    %107 = vector.extract_strided_slice %106 {offsets = [0, 0], sizes = [8, 384], strides = [1, 1]} : vector<8x512xf32> to vector<8x384xf32>
    %108 = arith.negf %107 : vector<8x384xf32>
    %109 = math.exp %108 : vector<8x384xf32>
    %cst_55 = arith.constant 1.000000e+00 : f32
    %110 = vector.broadcast %cst_55 : f32 to vector<8x384xf32>
    %111 = arith.addf %110, %109 : vector<8x384xf32>
    %112 = arith.divf %110, %111 : vector<8x384xf32>
    %113 = vector.extract_strided_slice %112 {offsets = [0, 0], sizes = [8, 128], strides = [1, 1]} : vector<8x384xf32> to vector<8x128xf32>
    %114 = vector.extract_strided_slice %112 {offsets = [0, 128], sizes = [8, 128], strides = [1, 1]} : vector<8x384xf32> to vector<8x128xf32>
    %115 = vector.extract_strided_slice %112 {offsets = [0, 256], sizes = [8, 128], strides = [1, 1]} : vector<8x384xf32> to vector<8x128xf32>
    %116 = vector.extract_strided_slice %106 {offsets = [0, 384], sizes = [8, 128], strides = [1, 1]} : vector<8x512xf32> to vector<8x128xf32>
    %117 = math.tanh %116 : vector<8x128xf32>
    %c0_56 = arith.constant 0 : index
    %c0_57 = arith.constant 0 : index
    %118 = vector.load %arg6[%c0_56, %c0_57] : memref<8x128xf32, #tpu.memory_space<vmem>>, vector<8x128xf32>
    %119 = arith.mulf %114, %118 : vector<8x128xf32>
    %120 = arith.mulf %113, %117 : vector<8x128xf32>
    %121 = arith.addf %119, %120 : vector<8x128xf32>
    %122 = math.tanh %121 : vector<8x128xf32>
    %123 = arith.mulf %115, %122 : vector<8x128xf32>
    %c0_58 = arith.constant 0 : index
    %c0_59 = arith.constant 0 : index
    %124 = vector.load %arg6[%c0_58, %c0_59] : memref<8x128xf32, #tpu.memory_space<vmem>>, vector<8x128xf32>
    tpu.vector_store %arg6[%c0_58, %c0_59], %121 {strides = array<i32>} : memref<8x128xf32, #tpu.memory_space<vmem>>, vector<8x128xf32>,
    %125 = arith.truncf %123 : vector<8x128xf32> to vector<8x128xbf16>
    %c0_60 = arith.constant 0 : index
    %c0_61 = arith.constant 0 : index
    %126 = vector.load %arg5[%c0_60, %c0_61] : memref<8x128xbf16, #tpu.memory_space<vmem>>, vector<8x128xbf16>
    tpu.vector_store %arg5[%c0_60, %c0_61], %125 {strides = array<i32>} : memref<8x128xbf16, #tpu.memory_space<vmem>>, vector<8x128xbf16>,
    %127 = arith.index_cast %c3_i32 : i32 to index
    %c0_62 = arith.constant 0 : index
    %c0_63 = arith.constant 0 : index
    %128 = vector.load %arg4[%127, %c0_62, %c0_63] : memref<8x8x128xf32, #tpu.memory_space<vmem>>, vector<1x8x128xf32>
    %129 = vector.shape_cast %128 : vector<1x8x128xf32> to vector<8x128xf32>
    %130 = vector.shape_cast %123 : vector<8x128xf32> to vector<1x8x128xf32>
    tpu.vector_store %arg4[%127, %c0_62, %c0_63], %130 {strides = array<i32>} : memref<8x8x128xf32, #tpu.memory_space<vmem>>, vector<1x8x128xf32>,
    %c4_i32 = arith.constant 4 : i32
    %131 = arith.index_cast %c4_i32 : i32 to index
    %c0_64 = arith.constant 0 : index
    %c0_65 = arith.constant 0 : index
    %132 = vector.load %arg2[%131, %c0_64, %c0_65] : memref<8x8x512xbf16, #tpu.memory_space<vmem>>, vector<1x8x512xbf16>
    %133 = vector.shape_cast %132 : vector<1x8x512xbf16> to vector<8x512xbf16>
    %134 = arith.extf %133 : vector<8x512xbf16> to vector<8x512xf32>
    %c0_66 = arith.constant 0 : index
    %c0_67 = arith.constant 0 : index
    %135 = vector.load %arg5[%c0_66, %c0_67] : memref<8x128xbf16, #tpu.memory_space<vmem>>, vector<8x128xbf16>
    %c0_68 = arith.constant 0 : index
    %c0_69 = arith.constant 0 : index
    %136 = vector.load %arg3[%c0_68, %c0_69] : memref<128x512xbf16, #tpu.memory_space<vmem>>, vector<128x512xbf16>
    %cst_70 = arith.constant dense<0.000000e+00> : vector<8x512xf32>
    %137 = tpu.matmul %135, %136, %cst_70 {dimension_numbers = #tpu.dot_dimension_numbers<[1], [0], [0], [1], [0, 0, 1, 1], [], []>} : vector<8x128xbf16>, vector<128x512xbf16>, vector<8x512xf32> -> vector<8x512xf32>
    %138 = arith.addf %134, %137 : vector<8x512xf32>
    %139 = vector.extract_strided_slice %138 {offsets = [0, 0], sizes = [8, 384], strides = [1, 1]} : vector<8x512xf32> to vector<8x384xf32>
    %140 = arith.negf %139 : vector<8x384xf32>
    %141 = math.exp %140 : vector<8x384xf32>
    %cst_71 = arith.constant 1.000000e+00 : f32
    %142 = vector.broadcast %cst_71 : f32 to vector<8x384xf32>
    %143 = arith.addf %142, %141 : vector<8x384xf32>
    %144 = arith.divf %142, %143 : vector<8x384xf32>
    %145 = vector.extract_strided_slice %144 {offsets = [0, 0], sizes = [8, 128], strides = [1, 1]} : vector<8x384xf32> to vector<8x128xf32>
    %146 = vector.extract_strided_slice %144 {offsets = [0, 128], sizes = [8, 128], strides = [1, 1]} : vector<8x384xf32> to vector<8x128xf32>
    %147 = vector.extract_strided_slice %144 {offsets = [0, 256], sizes = [8, 128], strides = [1, 1]} : vector<8x384xf32> to vector<8x128xf32>
    %148 = vector.extract_strided_slice %138 {offsets = [0, 384], sizes = [8, 128], strides = [1, 1]} : vector<8x512xf32> to vector<8x128xf32>
    %149 = math.tanh %148 : vector<8x128xf32>
    %c0_72 = arith.constant 0 : index
    %c0_73 = arith.constant 0 : index
    %150 = vector.load %arg6[%c0_72, %c0_73] : memref<8x128xf32, #tpu.memory_space<vmem>>, vector<8x128xf32>
    %151 = arith.mulf %146, %150 : vector<8x128xf32>
    %152 = arith.mulf %145, %149 : vector<8x128xf32>
    %153 = arith.addf %151, %152 : vector<8x128xf32>
    %154 = math.tanh %153 : vector<8x128xf32>
    %155 = arith.mulf %147, %154 : vector<8x128xf32>
    %c0_74 = arith.constant 0 : index
    %c0_75 = arith.constant 0 : index
    %156 = vector.load %arg6[%c0_74, %c0_75] : memref<8x128xf32, #tpu.memory_space<vmem>>, vector<8x128xf32>
    tpu.vector_store %arg6[%c0_74, %c0_75], %153 {strides = array<i32>} : memref<8x128xf32, #tpu.memory_space<vmem>>, vector<8x128xf32>,
    %157 = arith.truncf %155 : vector<8x128xf32> to vector<8x128xbf16>
    %c0_76 = arith.constant 0 : index
    %c0_77 = arith.constant 0 : index
    %158 = vector.load %arg5[%c0_76, %c0_77] : memref<8x128xbf16, #tpu.memory_space<vmem>>, vector<8x128xbf16>
    tpu.vector_store %arg5[%c0_76, %c0_77], %157 {strides = array<i32>} : memref<8x128xbf16, #tpu.memory_space<vmem>>, vector<8x128xbf16>,
    %159 = arith.index_cast %c4_i32 : i32 to index
    %c0_78 = arith.constant 0 : index
    %c0_79 = arith.constant 0 : index
    %160 = vector.load %arg4[%159, %c0_78, %c0_79] : memref<8x8x128xf32, #tpu.memory_space<vmem>>, vector<1x8x128xf32>
    %161 = vector.shape_cast %160 : vector<1x8x128xf32> to vector<8x128xf32>
    %162 = vector.shape_cast %155 : vector<8x128xf32> to vector<1x8x128xf32>
    tpu.vector_store %arg4[%159, %c0_78, %c0_79], %162 {strides = array<i32>} : memref<8x8x128xf32, #tpu.memory_space<vmem>>, vector<1x8x128xf32>,
    %c5_i32 = arith.constant 5 : i32
    %163 = arith.index_cast %c5_i32 : i32 to index
    %c0_80 = arith.constant 0 : index
    %c0_81 = arith.constant 0 : index
    %164 = vector.load %arg2[%163, %c0_80, %c0_81] : memref<8x8x512xbf16, #tpu.memory_space<vmem>>, vector<1x8x512xbf16>
    %165 = vector.shape_cast %164 : vector<1x8x512xbf16> to vector<8x512xbf16>
    %166 = arith.extf %165 : vector<8x512xbf16> to vector<8x512xf32>
    %c0_82 = arith.constant 0 : index
    %c0_83 = arith.constant 0 : index
    %167 = vector.load %arg5[%c0_82, %c0_83] : memref<8x128xbf16, #tpu.memory_space<vmem>>, vector<8x128xbf16>
    %c0_84 = arith.constant 0 : index
    %c0_85 = arith.constant 0 : index
    %168 = vector.load %arg3[%c0_84, %c0_85] : memref<128x512xbf16, #tpu.memory_space<vmem>>, vector<128x512xbf16>
    %cst_86 = arith.constant dense<0.000000e+00> : vector<8x512xf32>
    %169 = tpu.matmul %167, %168, %cst_86 {dimension_numbers = #tpu.dot_dimension_numbers<[1], [0], [0], [1], [0, 0, 1, 1], [], []>} : vector<8x128xbf16>, vector<128x512xbf16>, vector<8x512xf32> -> vector<8x512xf32>
    %170 = arith.addf %166, %169 : vector<8x512xf32>
    %171 = vector.extract_strided_slice %170 {offsets = [0, 0], sizes = [8, 384], strides = [1, 1]} : vector<8x512xf32> to vector<8x384xf32>
    %172 = arith.negf %171 : vector<8x384xf32>
    %173 = math.exp %172 : vector<8x384xf32>
    %cst_87 = arith.constant 1.000000e+00 : f32
    %174 = vector.broadcast %cst_87 : f32 to vector<8x384xf32>
    %175 = arith.addf %174, %173 : vector<8x384xf32>
    %176 = arith.divf %174, %175 : vector<8x384xf32>
    %177 = vector.extract_strided_slice %176 {offsets = [0, 0], sizes = [8, 128], strides = [1, 1]} : vector<8x384xf32> to vector<8x128xf32>
    %178 = vector.extract_strided_slice %176 {offsets = [0, 128], sizes = [8, 128], strides = [1, 1]} : vector<8x384xf32> to vector<8x128xf32>
    %179 = vector.extract_strided_slice %176 {offsets = [0, 256], sizes = [8, 128], strides = [1, 1]} : vector<8x384xf32> to vector<8x128xf32>
    %180 = vector.extract_strided_slice %170 {offsets = [0, 384], sizes = [8, 128], strides = [1, 1]} : vector<8x512xf32> to vector<8x128xf32>
    %181 = math.tanh %180 : vector<8x128xf32>
    %c0_88 = arith.constant 0 : index
    %c0_89 = arith.constant 0 : index
    %182 = vector.load %arg6[%c0_88, %c0_89] : memref<8x128xf32, #tpu.memory_space<vmem>>, vector<8x128xf32>
    %183 = arith.mulf %178, %182 : vector<8x128xf32>
    %184 = arith.mulf %177, %181 : vector<8x128xf32>
    %185 = arith.addf %183, %184 : vector<8x128xf32>
    %186 = math.tanh %185 : vector<8x128xf32>
    %187 = arith.mulf %179, %186 : vector<8x128xf32>
    %c0_90 = arith.constant 0 : index
    %c0_91 = arith.constant 0 : index
    %188 = vector.load %arg6[%c0_90, %c0_91] : memref<8x128xf32, #tpu.memory_space<vmem>>, vector<8x128xf32>
    tpu.vector_store %arg6[%c0_90, %c0_91], %185 {strides = array<i32>} : memref<8x128xf32, #tpu.memory_space<vmem>>, vector<8x128xf32>,
    %189 = arith.truncf %187 : vector<8x128xf32> to vector<8x128xbf16>
    %c0_92 = arith.constant 0 : index
    %c0_93 = arith.constant 0 : index
    %190 = vector.load %arg5[%c0_92, %c0_93] : memref<8x128xbf16, #tpu.memory_space<vmem>>, vector<8x128xbf16>
    tpu.vector_store %arg5[%c0_92, %c0_93], %189 {strides = array<i32>} : memref<8x128xbf16, #tpu.memory_space<vmem>>, vector<8x128xbf16>,
    %191 = arith.index_cast %c5_i32 : i32 to index
    %c0_94 = arith.constant 0 : index
    %c0_95 = arith.constant 0 : index
    %192 = vector.load %arg4[%191, %c0_94, %c0_95] : memref<8x8x128xf32, #tpu.memory_space<vmem>>, vector<1x8x128xf32>
    %193 = vector.shape_cast %192 : vector<1x8x128xf32> to vector<8x128xf32>
    %194 = vector.shape_cast %187 : vector<8x128xf32> to vector<1x8x128xf32>
    tpu.vector_store %arg4[%191, %c0_94, %c0_95], %194 {strides = array<i32>} : memref<8x8x128xf32, #tpu.memory_space<vmem>>, vector<1x8x128xf32>,
    %c6_i32 = arith.constant 6 : i32
    %195 = arith.index_cast %c6_i32 : i32 to index
    %c0_96 = arith.constant 0 : index
    %c0_97 = arith.constant 0 : index
    %196 = vector.load %arg2[%195, %c0_96, %c0_97] : memref<8x8x512xbf16, #tpu.memory_space<vmem>>, vector<1x8x512xbf16>
    %197 = vector.shape_cast %196 : vector<1x8x512xbf16> to vector<8x512xbf16>
    %198 = arith.extf %197 : vector<8x512xbf16> to vector<8x512xf32>
    %c0_98 = arith.constant 0 : index
    %c0_99 = arith.constant 0 : index
    %199 = vector.load %arg5[%c0_98, %c0_99] : memref<8x128xbf16, #tpu.memory_space<vmem>>, vector<8x128xbf16>
    %c0_100 = arith.constant 0 : index
    %c0_101 = arith.constant 0 : index
    %200 = vector.load %arg3[%c0_100, %c0_101] : memref<128x512xbf16, #tpu.memory_space<vmem>>, vector<128x512xbf16>
    %cst_102 = arith.constant dense<0.000000e+00> : vector<8x512xf32>
    %201 = tpu.matmul %199, %200, %cst_102 {dimension_numbers = #tpu.dot_dimension_numbers<[1], [0], [0], [1], [0, 0, 1, 1], [], []>} : vector<8x128xbf16>, vector<128x512xbf16>, vector<8x512xf32> -> vector<8x512xf32>
    %202 = arith.addf %198, %201 : vector<8x512xf32>
    %203 = vector.extract_strided_slice %202 {offsets = [0, 0], sizes = [8, 384], strides = [1, 1]} : vector<8x512xf32> to vector<8x384xf32>
    %204 = arith.negf %203 : vector<8x384xf32>
    %205 = math.exp %204 : vector<8x384xf32>
    %cst_103 = arith.constant 1.000000e+00 : f32
    %206 = vector.broadcast %cst_103 : f32 to vector<8x384xf32>
    %207 = arith.addf %206, %205 : vector<8x384xf32>
    %208 = arith.divf %206, %207 : vector<8x384xf32>
    %209 = vector.extract_strided_slice %208 {offsets = [0, 0], sizes = [8, 128], strides = [1, 1]} : vector<8x384xf32> to vector<8x128xf32>
    %210 = vector.extract_strided_slice %208 {offsets = [0, 128], sizes = [8, 128], strides = [1, 1]} : vector<8x384xf32> to vector<8x128xf32>
    %211 = vector.extract_strided_slice %208 {offsets = [0, 256], sizes = [8, 128], strides = [1, 1]} : vector<8x384xf32> to vector<8x128xf32>
    %212 = vector.extract_strided_slice %202 {offsets = [0, 384], sizes = [8, 128], strides = [1, 1]} : vector<8x512xf32> to vector<8x128xf32>
    %213 = math.tanh %212 : vector<8x128xf32>
    %c0_104 = arith.constant 0 : index
    %c0_105 = arith.constant 0 : index
    %214 = vector.load %arg6[%c0_104, %c0_105] : memref<8x128xf32, #tpu.memory_space<vmem>>, vector<8x128xf32>
    %215 = arith.mulf %210, %214 : vector<8x128xf32>
    %216 = arith.mulf %209, %213 : vector<8x128xf32>
    %217 = arith.addf %215, %216 : vector<8x128xf32>
    %218 = math.tanh %217 : vector<8x128xf32>
    %219 = arith.mulf %211, %218 : vector<8x128xf32>
    %c0_106 = arith.constant 0 : index
    %c0_107 = arith.constant 0 : index
    %220 = vector.load %arg6[%c0_106, %c0_107] : memref<8x128xf32, #tpu.memory_space<vmem>>, vector<8x128xf32>
    tpu.vector_store %arg6[%c0_106, %c0_107], %217 {strides = array<i32>} : memref<8x128xf32, #tpu.memory_space<vmem>>, vector<8x128xf32>,
    %221 = arith.truncf %219 : vector<8x128xf32> to vector<8x128xbf16>
    %c0_108 = arith.constant 0 : index
    %c0_109 = arith.constant 0 : index
    %222 = vector.load %arg5[%c0_108, %c0_109] : memref<8x128xbf16, #tpu.memory_space<vmem>>, vector<8x128xbf16>
    tpu.vector_store %arg5[%c0_108, %c0_109], %221 {strides = array<i32>} : memref<8x128xbf16, #tpu.memory_space<vmem>>, vector<8x128xbf16>,
    %223 = arith.index_cast %c6_i32 : i32 to index
    %c0_110 = arith.constant 0 : index
    %c0_111 = arith.constant 0 : index
    %224 = vector.load %arg4[%223, %c0_110, %c0_111] : memref<8x8x128xf32, #tpu.memory_space<vmem>>, vector<1x8x128xf32>
    %225 = vector.shape_cast %224 : vector<1x8x128xf32> to vector<8x128xf32>
    %226 = vector.shape_cast %219 : vector<8x128xf32> to vector<1x8x128xf32>
    tpu.vector_store %arg4[%223, %c0_110, %c0_111], %226 {strides = array<i32>} : memref<8x8x128xf32, #tpu.memory_space<vmem>>, vector<1x8x128xf32>,
    %c7_i32 = arith.constant 7 : i32
    %227 = arith.index_cast %c7_i32 : i32 to index
    %c0_112 = arith.constant 0 : index
    %c0_113 = arith.constant 0 : index
    %228 = vector.load %arg2[%227, %c0_112, %c0_113] : memref<8x8x512xbf16, #tpu.memory_space<vmem>>, vector<1x8x512xbf16>
    %229 = vector.shape_cast %228 : vector<1x8x512xbf16> to vector<8x512xbf16>
    %230 = arith.extf %229 : vector<8x512xbf16> to vector<8x512xf32>
    %c0_114 = arith.constant 0 : index
    %c0_115 = arith.constant 0 : index
    %231 = vector.load %arg5[%c0_114, %c0_115] : memref<8x128xbf16, #tpu.memory_space<vmem>>, vector<8x128xbf16>
    %c0_116 = arith.constant 0 : index
    %c0_117 = arith.constant 0 : index
    %232 = vector.load %arg3[%c0_116, %c0_117] : memref<128x512xbf16, #tpu.memory_space<vmem>>, vector<128x512xbf16>
    %cst_118 = arith.constant dense<0.000000e+00> : vector<8x512xf32>
    %233 = tpu.matmul %231, %232, %cst_118 {dimension_numbers = #tpu.dot_dimension_numbers<[1], [0], [0], [1], [0, 0, 1, 1], [], []>} : vector<8x128xbf16>, vector<128x512xbf16>, vector<8x512xf32> -> vector<8x512xf32>
    %234 = arith.addf %230, %233 : vector<8x512xf32>
    %235 = vector.extract_strided_slice %234 {offsets = [0, 0], sizes = [8, 384], strides = [1, 1]} : vector<8x512xf32> to vector<8x384xf32>
    %236 = arith.negf %235 : vector<8x384xf32>
    %237 = math.exp %236 : vector<8x384xf32>
    %cst_119 = arith.constant 1.000000e+00 : f32
    %238 = vector.broadcast %cst_119 : f32 to vector<8x384xf32>
    %239 = arith.addf %238, %237 : vector<8x384xf32>
    %240 = arith.divf %238, %239 : vector<8x384xf32>
    %241 = vector.extract_strided_slice %240 {offsets = [0, 0], sizes = [8, 128], strides = [1, 1]} : vector<8x384xf32> to vector<8x128xf32>
    %242 = vector.extract_strided_slice %240 {offsets = [0, 128], sizes = [8, 128], strides = [1, 1]} : vector<8x384xf32> to vector<8x128xf32>
    %243 = vector.extract_strided_slice %240 {offsets = [0, 256], sizes = [8, 128], strides = [1, 1]} : vector<8x384xf32> to vector<8x128xf32>
    %244 = vector.extract_strided_slice %234 {offsets = [0, 384], sizes = [8, 128], strides = [1, 1]} : vector<8x512xf32> to vector<8x128xf32>
    %245 = math.tanh %244 : vector<8x128xf32>
    %c0_120 = arith.constant 0 : index
    %c0_121 = arith.constant 0 : index
    %246 = vector.load %arg6[%c0_120, %c0_121] : memref<8x128xf32, #tpu.memory_space<vmem>>, vector<8x128xf32>
    %247 = arith.mulf %242, %246 : vector<8x128xf32>
    %248 = arith.mulf %241, %245 : vector<8x128xf32>
    %249 = arith.addf %247, %248 : vector<8x128xf32>
    %250 = math.tanh %249 : vector<8x128xf32>
    %251 = arith.mulf %243, %250 : vector<8x128xf32>
    %c0_122 = arith.constant 0 : index
    %c0_123 = arith.constant 0 : index
    %252 = vector.load %arg6[%c0_122, %c0_123] : memref<8x128xf32, #tpu.memory_space<vmem>>, vector<8x128xf32>
    tpu.vector_store %arg6[%c0_122, %c0_123], %249 {strides = array<i32>} : memref<8x128xf32, #tpu.memory_space<vmem>>, vector<8x128xf32>,
    %253 = arith.truncf %251 : vector<8x128xf32> to vector<8x128xbf16>
    %c0_124 = arith.constant 0 : index
    %c0_125 = arith.constant 0 : index
    %254 = vector.load %arg5[%c0_124, %c0_125] : memref<8x128xbf16, #tpu.memory_space<vmem>>, vector<8x128xbf16>
    tpu.vector_store %arg5[%c0_124, %c0_125], %253 {strides = array<i32>} : memref<8x128xbf16, #tpu.memory_space<vmem>>, vector<8x128xbf16>,
    %255 = arith.index_cast %c7_i32 : i32 to index
    %c0_126 = arith.constant 0 : index
    %c0_127 = arith.constant 0 : index
    %256 = vector.load %arg4[%255, %c0_126, %c0_127] : memref<8x8x128xf32, #tpu.memory_space<vmem>>, vector<1x8x128xf32>
    %257 = vector.shape_cast %256 : vector<1x8x128xf32> to vector<8x128xf32>
    %258 = vector.shape_cast %251 : vector<8x128xf32> to vector<1x8x128xf32>
    tpu.vector_store %arg4[%255, %c0_126, %c0_127], %258 {strides = array<i32>} : memref<8x8x128xf32, #tpu.memory_space<vmem>>, vector<1x8x128xf32>,
    %c8_i32 = arith.constant 8 : i32
    return
  }
  func.func @transform_0(%arg0: i32, %arg1: i32) -> (i32, i32, i32) {
    %c0_i32 = arith.constant 0 : i32
    %c0_i32_0 = arith.constant 0 : i32
    return %arg1, %arg0, %c0_i32 : i32, i32, i32
  }
  func.func @transform_1(%arg0: i32, %arg1: i32) -> (i32, i32) {
    %c0_i32 = arith.constant 0 : i32
    %c0_i32_0 = arith.constant 0 : i32
    %c0_i32_1 = arith.constant 0 : i32
    return %c0_i32, %c0_i32_0 : i32, i32
  }
  func.func @transform_2(%arg0: i32, %arg1: i32) -> (i32, i32, i32) {
    %c0_i32 = arith.constant 0 : i32
    %c0_i32_0 = arith.constant 0 : i32
    return %arg1, %arg0, %c0_i32 : i32, i32, i32
  }
}

</mosaic_0001>

<bundles_post_ra>
// kernel: decoder_lstm_forward.3
= control target key start
LH: loop header
LB: loop body
LE: loop exit
PB: predicated region body
PF: predicated region fallthrough
CT: control target
= control target key end

     0   :  { %s598_s12 = smov 0   ;;  %s600_s13 = smov 0   ;;  %s658_s0 = inlined_call_operand.vmem [shape: f32[8,1024], index: 0, kind: input, shape index: {}]   ;;  %s659_s1 = inlined_call_operand.vmem [shape: bf16[128,128], index: 1, kind: input, shape index: {}]   ;;  %s660_s2 = inlined_call_operand.vmem [shape: f32[1,128], index: 2, kind: input, shape index: {}]   ;;  %s661_s3 = inlined_call_operand.vmem [shape: f32[64,128], index: 3, kind: output, shape index: {}]  }
   0x1   :  { %s602_s14 = smov 0  }
   0x2 LB: > { %s28_s15 = sadd.s32 1, %s570_s13  ;;  %p475_p0 = scmp.ge.s32.totalorder %s574_s14, 1  ;;  %s574_s14 = sphi %s602_s14, %s13_s14   ;;  %s570_s13 = sphi %s600_s13, %s663_s13   ;;  %s566_s12 = sphi %s598_s12, %s662_s12  }
   0x3   : > { %p30_p1 = scmp.ge.s32.totalorder %s28_s15, 8  ;;  %p182_p2 = scmp.lt.s32.totalorder %s574_s14, 9 }
   0x5   : > { %s665_s15 = smov (%p30_p1, %s28_s15), 0  ;;  %p183_p3 = pnand %p475_p0, %p182_p2 }
   0x6   : > { %p221_p4 = scmp.lt.s32.totalorder (!%p183_p3), %s566_s12, 7 }
   0x7   : > { %186 = sbr.rel (%p183_p3) target bundleno = 244 (0xf4), region = 32 }
   0xc   : > { %v544_v0 = vld [vmem:[%s659_s1 + $0x38] sm:$0xff]   ;;  %v576_v1 = vmov 0.0   ;;  %v545_v2 = vld [vmem:[%s659_s1 + $0x30] sm:$0xff]   ;;  %vm577_vm0 = vmmov 0   ;;  %v546_v3 = vld [vmem:[%s659_s1 + $0x28] sm:$0xff]   ;;  %s667_s12 = smov (!%p221_p4, %s566_s12), 7 }
   0xd   : > { %498 = vmatprep.subr.bf16.mxu0 %v576_v1  ;;  %514 = vmatprep.mubr.msk.bf16.mxu0 %vm577_vm0, %v576_v1  ;;  %v547_v4 = vld [vmem:[%s659_s1 + $0x20] sm:$0xff]   ;;  %v548_v5 = vld [vmem:[%s659_s1 + $0x18] sm:$0xff]   ;;  %v549_v6 = vld [vmem:[%s659_s1 + $0x10] sm:$0xff]   ;;  %s476_s28 = sshll.u32 %s667_s12, 3 }
   0xe   : > { %499 = vmatpush3.bf16.msra.mxu0 %v544_v0  ;;  %v550_v7 = vld [vmem:[%s659_s1 + $0x8] sm:$0xff]   ;;  %s226_s6 = scalar_lea.vmem %s658_s0, %s476_s28  ;;  %v551_v8 = vld [vmem:[%s659_s1] sm:$0xff]   ;;  %s241_s16 = scalar_lea.vmem %s661_s3, %s476_s28 }
   0xf   : > { %500 = vmatprep.subr.bf16.mxu0 %v576_v1  ;;  %v244_v9 = vld [vmem:[%s226_s6] sm:$0xff] }
  0x10   : > { %v245_v10 = vpack.c.bf16 %v244_v9, %v244_v9  ;;  %v478_v11 = vld [vmem:[%s660_s2] ss:$0 sm:$0xff] }
  0x12   : > { %501 = vmatpush3.bf16.msra.mxu0 %v545_v2 }
  0x13   : > { %502 = vmatprep.subr.bf16.mxu0 %v576_v1 }
  0x16   : > { %503 = vmatpush3.bf16.msra.mxu0 %v546_v3 }
  0x17   : > { %504 = vmatprep.subr.bf16.mxu0 %v576_v1 }
  0x1a   : > { %505 = vmatpush3.bf16.msra.mxu0 %v547_v4 }
  0x1b   : > { %506 = vmatprep.subr.bf16.mxu0 %v576_v1 }
  0x1e   : > { %507 = vmatpush3.bf16.msra.mxu0 %v548_v5 }
  0x1f   : > { %508 = vmatprep.subr.bf16.mxu0 %v576_v1 }
  0x22   : > { %509 = vmatpush3.bf16.msra.mxu0 %v549_v6 }
  0x23   : > { %510 = vmatprep.subr.bf16.mxu0 %v576_v1 }
  0x26   : > { %511 = vmatpush3.bf16.msra.mxu0 %v550_v7 }
  0x27   : > { %512 = vmatprep.subr.bf16.mxu0 %v576_v1 }
  0x2a   : > { %513 = vmatpush3.bf16.msra.mxu0 %v551_v8 }
  0x2d   : > { %515 = vmatmul.mubr.bf16.vlgmr.msra.gmra.mxu0 %v245_v10 }
  0xed   : > { %v351_v12 = vpop.f32.mrf.mxu0 }
  0xee   : > { %v352_v13 = vadd.f32 %v478_v11, %v351_v12 }
  0xef   : > { %v516_v14 = vpop.f32.mrf.mxu0 }
  0xf0   : > { %357 = vst [vmem:[%s241_s16] sm:$0xff] %v352_v13 }
  0xf1   : > { %v354_v15 = vpop.f32.mrf.mxu0 }
  0xf3   : > { %v517_v16 = vpop.f32.mrf.mxu0 }
  0xf4 PF: > { %s13_s14 = sadd.s32 1, %s574_s14   ;;  %s662_s12 = smov %s570_s13 }
  0xf5   : > { %p10_p5 = scmp.ge.s32.totalorder %s13_s14, 10   ;;  %s663_s13 = smov %s665_s15 }
  0xf7   :  { %12 = sbr.rel (!%p10_p5) target bundleno = 2 (0x2), region = 68 }

// kernel: decoder_lstm_forward.2
= control target key start
LH: loop header
LB: loop body
LE: loop exit
PB: predicated region body
PF: predicated region fallthrough
CT: control target
= control target key end

     0   :  { %v3074_v1 = vmov 0   ;;  %s3779_s1 = inlined_call_operand.vmem [shape: bf16[128,512], index: 1, kind: input, shape index: {}]   ;;  %s3780_s0 = inlined_call_operand.vmem [shape: bf16[8,8,512], index: 0, kind: input, shape index: {}]   ;;  %s3781_s2 = inlined_call_operand.vmem [shape: f32[8,8,128], index: 2, kind: output, shape index: {}]  }
   0x1   :  { %v3093_v0 = vld [vmem:[%s3779_s1 + $0xe4] ss:$16 sps:$4 sm:$0xff]   ;;  %249 = vmatprep.mubr.bf16.mxu0 %v3074_v1  ;;  %16 = vst [vmem:[#allocation2] sm:$0xf] %v3074_v1  ;;  %290 = vmatprep.mubr.bf16.mxu1 %v3074_v1  ;;  %v3101_v2 = vld [vmem:[%s3779_s1 + $0xe0] ss:$16 sps:$4 sm:$0xff]  }
   0x2   :  { %217 = vmatprep.subr.bf16.mxu0 %v3093_v0  ;;  %v3107_v3 = vld [vmem:[%s3779_s1 + $0xc4] ss:$16 sps:$4 sm:$0xff]   ;;  %v3113_v4 = vld [vmem:[%s3779_s1 + $0xc0] ss:$16 sps:$4 sm:$0xff]   ;;  %v3124_v6 = vld [vmem:[%s3779_s1 + $0xec] ss:$16 sps:$4 sm:$0xff]  }
   0x3   :  { %218 = vmatpush1.bf16.msra.mxu0 %v3101_v2  ;;  %v3119_v5 = vld [vmem:[%s3779_s1 + $0xa4] ss:$16 sps:$4 sm:$0xff]   ;;  %v3129_v7 = vld [vmem:[%s3779_s1 + $0xe8] ss:$16 sps:$4 sm:$0xff]   ;;  %v3135_v8 = vld [vmem:[%s3779_s1 + $0xa0] ss:$16 sps:$4 sm:$0xff]   ;;  %258 = vmatprep.subr.bf16.mxu1 %v3124_v6 }
   0x4   :  { %219 = vmatprep.subr.bf16.mxu0 %v3107_v3  ;;  %v3142_v9 = vld [vmem:[%s3779_s1 + $0x84] ss:$16 sps:$4 sm:$0xff]   ;;  %259 = vmatpush1.bf16.msra.mxu1 %v3129_v7  ;;  %v3148_v10 = vld [vmem:[%s3779_s1 + $0xcc] ss:$16 sps:$4 sm:$0xff]   ;;  %v3153_v11 = vld [vmem:[%s3779_s1 + $0xc8] ss:$16 sps:$4 sm:$0xff]  }
   0x5   :  { %260 = vmatprep.subr.bf16.mxu1 %v3148_v10  ;;  %v3160_v12 = vld [vmem:[%s3779_s1 + $0x80] ss:$16 sps:$4 sm:$0xff]   ;;  %v3165_v13 = vld [vmem:[%s3779_s1 + $0x64] ss:$16 sps:$4 sm:$0xff]   ;;  %v3170_v14 = vld [vmem:[%s3779_s1 + $0xac] ss:$16 sps:$4 sm:$0xff]  }
   0x6   :  { %v3177_v15 = vld [vmem:[%s3779_s1 + $0xa8] ss:$16 sps:$4 sm:$0xff]   ;;  %v3183_v16 = vld [vmem:[%s3779_s1 + $0x8c] ss:$16 sps:$4 sm:$0xff]   ;;  %v3189_v17 = vld [vmem:[%s3779_s1 + $0x60] ss:$16 sps:$4 sm:$0xff]  }
   0x7   :  { %220 = vmatpush1.bf16.msra.mxu0 %v3113_v4  ;;  %v3195_v18 = vld [vmem:[%s3779_s1 + $0x44] ss:$16 sps:$4 sm:$0xff]   ;;  %v3201_v19 = vld [vmem:[%s3779_s1 + $0x88] ss:$16 sps:$4 sm:$0xff]   ;;  %v3207_v20 = vld [vmem:[%s3779_s1 + $0x6c] ss:$16 sps:$4 sm:$0xff]  }
   0x8   :  { %221 = vmatprep.subr.bf16.mxu0 %v3119_v5  ;;  %261 = vmatpush1.bf16.msra.mxu1 %v3153_v11  ;;  %v3212_v21 = vld [vmem:[%s3779_s1 + $0x40] ss:$16 sps:$4 sm:$0xff]   ;;  %v3218_v22 = vld [vmem:[%s3779_s1 + $0x24] ss:$16 sps:$4 sm:$0xff]   ;;  %v3225_v23 = vld [vmem:[%s3779_s1 + $0x68] ss:$16 sps:$4 sm:$0xff]  }
   0x9   :  { %262 = vmatprep.subr.bf16.mxu1 %v3170_v14  ;;  %v3230_v24 = vld [vmem:[%s3779_s1 + $0x20] ss:$16 sps:$4 sm:$0xff]   ;;  %v3236_v25 = vld [vmem:[%s3779_s1 + $0x4c] ss:$16 sps:$4 sm:$0xff]   ;;  %v3241_v26 = vld [vmem:[%s3779_s1 + $0x4] ss:$16 sps:$4 sm:$0xff]  }
   0xa   :  { %v3246_v27 = vld [vmem:[%s3779_s1 + $0x48] ss:$16 sps:$4 sm:$0xff]   ;;  %v3252_v28 = vld [vmem:[%s3779_s1 + $0x2c] ss:$16 sps:$4 sm:$0xff]   ;;  %v3259_v29 = vld [vmem:[%s3779_s1] ss:$16 sps:$4 sm:$0xff]  }
   0xb   :  { %222 = vmatpush1.bf16.msra.mxu0 %v3135_v8  ;;  %v3265_v30 = vld [vmem:[%s3779_s1 + $0x28] ss:$16 sps:$4 sm:$0xff]   ;;  %v3271_v31 = vld [vmem:[%s3779_s1 + $0xc] ss:$16 sps:$4 sm:$0xff]   ;;  %v24_v32 = vld [vmem:[#allocation2] sm:$0xf] }
   0xc   :  { %223 = vmatprep.subr.bf16.mxu0 %v3142_v9  ;;  %263 = vmatpush1.bf16.msra.mxu1 %v3177_v15  ;;  %v3281_v33 = vld [vmem:[%s3779_s1 + $0x8] ss:$16 sps:$4 sm:$0xff]   ;;  %v18_v34 = vld [vmem:[%s3780_s0] sm:$0xff] }
   0xd   :  { %264 = vmatprep.subr.bf16.mxu1 %v3183_v16  ;;  %v20_v35 = vunpack.c.l.bf16 %v18_v34  ;;  %v21_v36 = vunpack.c.h.bf16 %v18_v34  ;;  %v19_v43 = vld [vmem:[%s3780_s0 + $0x8] sm:$0xff] }
   0xe   :  { %v22_v47 = vunpack.c.l.bf16 %v19_v43  ;;  %v23_v52 = vunpack.c.h.bf16 %v19_v43 }
   0xf   :  { %224 = vmatpush1.bf16.msra.mxu0 %v3160_v12 }
  0x10   :  { %225 = vmatprep.subr.bf16.mxu0 %v3165_v13  ;;  %265 = vmatpush1.bf16.msra.mxu1 %v3201_v19 }
  0x11   :  { %266 = vmatprep.subr.bf16.mxu1 %v3207_v20 }
  0x13   :  { %226 = vmatpush1.bf16.msra.mxu0 %v3189_v17 }
  0x14   :  { %227 = vmatprep.subr.bf16.mxu0 %v3195_v18  ;;  %267 = vmatpush1.bf16.msra.mxu1 %v3225_v23 }
  0x15   :  { %268 = vmatprep.subr.bf16.mxu1 %v3236_v25 }
  0x17   :  { %228 = vmatpush1.bf16.msra.mxu0 %v3212_v21 }
  0x18   :  { %229 = vmatprep.subr.bf16.mxu0 %v3218_v22  ;;  %269 = vmatpush1.bf16.msra.mxu1 %v3246_v27 }
  0x19   :  { %270 = vmatprep.subr.bf16.mxu1 %v3252_v28 }
  0x1b   :  { %230 = vmatpush1.bf16.msra.mxu0 %v3230_v24 }
  0x1c   :  { %231 = vmatprep.subr.bf16.mxu0 %v3241_v26  ;;  %271 = vmatpush1.bf16.msra.mxu1 %v3265_v30 }
  0x1d   :  { %272 = vmatprep.subr.bf16.mxu1 %v3271_v31 }
  0x1f   :  { %232 = vmatpush1.bf16.msra.mxu0 %v3259_v29 }
  0x20   :  { %532 = vmatprep.subr.bf16.mxu0 %v3093_v0  ;;  %273 = vmatpush1.bf16.msra.mxu1 %v3281_v33 }
  0x21   :  { %573 = vmatprep.subr.bf16.mxu1 %v3124_v6 }
  0x22   :  { %250 = vmatmul.mubr.bf16.vlgmr.msra.gmra.mxu0 %v24_v32 }
  0x23   :  { %533 = vmatpush1.bf16.msra.mxu0 %v3101_v2  ;;  %564 = vmatprep.mubr.bf16.mxu0 %v3074_v1 }
  0x24   :  { %534 = vmatprep.subr.bf16.mxu0 %v3107_v3  ;;  %291 = vmatmul.mubr.bf16.vlgmr.msra.gmra.mxu1 %v24_v32 }
  0x25   :  { %574 = vmatpush1.bf16.msra.mxu1 %v3129_v7  ;;  %605 = vmatprep.mubr.bf16.mxu1 %v3074_v1 }
  0x26   :  { %575 = vmatprep.subr.bf16.mxu1 %v3148_v10 }
  0x27   :  { %535 = vmatpush1.bf16.msra.mxu0 %v3113_v4 }
  0x28   :  { %536 = vmatprep.subr.bf16.mxu0 %v3119_v5 }
  0x29   :  { %576 = vmatpush1.bf16.msra.mxu1 %v3153_v11 }
  0x2a   :  { %577 = vmatprep.subr.bf16.mxu1 %v3170_v14 }
  0x2b   :  { %537 = vmatpush1.bf16.msra.mxu0 %v3135_v8 }
  0x2c   :  { %538 = vmatprep.subr.bf16.mxu0 %v3142_v9 }
  0x2d   :  { %578 = vmatpush1.bf16.msra.mxu1 %v3177_v15 }
  0x2e   :  { %579 = vmatprep.subr.bf16.mxu1 %v3183_v16 }
  0x2f   :  { %539 = vmatpush1.bf16.msra.mxu0 %v3160_v12 }
  0x30   :  { %540 = vmatprep.subr.bf16.mxu0 %v3165_v13 }
  0x31   :  { %580 = vmatpush1.bf16.msra.mxu1 %v3201_v19 }
  0x32   :  { %581 = vmatprep.subr.bf16.mxu1 %v3207_v20 }
  0x33   :  { %541 = vmatpush1.bf16.msra.mxu0 %v3189_v17 }
  0x34   :  { %542 = vmatprep.subr.bf16.mxu0 %v3195_v18 }
  0x35   :  { %582 = vmatpush1.bf16.msra.mxu1 %v3225_v23 }
  0x36   :  { %583 = vmatprep.subr.bf16.mxu1 %v3236_v25 }
  0x37   :  { %543 = vmatpush1.bf16.msra.mxu0 %v3212_v21 }
  0x38   :  { %544 = vmatprep.subr.bf16.mxu0 %v3218_v22 }
  0x39   :  { %584 = vmatpush1.bf16.msra.mxu1 %v3246_v27 }
  0x3a   :  { %585 = vmatprep.subr.bf16.mxu1 %v3252_v28 }
  0x3b   :  { %545 = vmatpush1.bf16.msra.mxu0 %v3230_v24 }
  0x3c   :  { %546 = vmatprep.subr.bf16.mxu0 %v3241_v26 }
  0x3d   :  { %586 = vmatpush1.bf16.msra.mxu1 %v3265_v30 }
  0x3e   :  { %587 = vmatprep.subr.bf16.mxu1 %v3271_v31 }
  0x3f   :  { %547 = vmatpush1.bf16.msra.mxu0 %v3259_v29 }
  0x40   :  { %848 = vmatprep.subr.bf16.mxu0 %v3093_v0 }
  0x41   :  { %588 = vmatpush1.bf16.msra.mxu1 %v3281_v33 }
  0x42   :  { %889 = vmatprep.subr.bf16.mxu1 %v3124_v6 }
  0xe2   :  { %v251_v37 = vpop.f32.mrf.mxu0 }
  0xe3   :  { %v299_v38 = vadd.f32 %v251_v37, %v20_v35 }
  0xe4   :  { %v253_v39 = vpop.f32.mrf.mxu0  ;;  %v292_v45 = vpop.f32.mrf.mxu1 }
  0xe5   :  { %v2580_v40 = vmul.f32 -1.442695, %v299_v38  ;;  %v300_v41 = vadd.f32 %v253_v39, %v21_v36  ;;  %v301_v50 = vadd.f32 %v292_v45, %v22_v47 }
  0xe6   :  { %v255_v42 = vpop.f32.mrf.mxu0  ;;  %v294_v48 = vpop.f32.mrf.mxu1 }
  0xe7   :  { %2946 = vpow2.f32 %v2580_v40  ;;  %v2581_v44 = vmul.f32 -1.442695, %v300_v41  ;;  %v2582_v53 = vmul.f32 -1.442695, %v301_v50  ;;  %v302_v54 = vadd.f32 %v294_v48, %v23_v52  ;;  %v2583_v41 = vld [vmem:[%s3780_s0 + $0x10] sm:$0xff] }
  0xe8   :  { %v256_v46 = vpop.f32.mrf.mxu0  ;;  %v296_v49 = vpop.f32.mrf.mxu1  ;;  %v335_v42 = vunpack.c.l.bf16 %v2583_v41  ;;  %v336_v43 = vunpack.c.h.bf16 %v2583_v41 }
  0xe9   :  { %2948 = vpow2.f32 %v2581_v44 }
  0xea   :  { %v297_v51 = vpop.f32.mrf.mxu1  ;;  %2950 = vpow2.f32 %v2582_v53 }
  0xeb   :  { %2952 = vtanh.f32 %v302_v54 }
  0xf4   :  { %v2947_v55 = vpop.eup %2946 }
  0xf5   :  { %v312_v56 = vadd.f32 1.0, %v2947_v55 }
  0xf6   :  { %v2949_v57 = vpop.eup %2948 }
  0xf7   :  { %2954 = vrcp.f32 %v312_v56  ;;  %v313_v58 = vadd.f32 1.0, %v2949_v57  ;;  %v2951_v59 = vpop.eup %2950 }
  0xf8   :  { %v2953_v60 = vpop.eup %2952  ;;  %v314_v63 = vadd.f32 1.0, %v2951_v59 }
  0xf9   :  { %2956 = vrcp.f32 %v313_v58 }
  0xfa   :  { %2958 = vrcp.f32 %v314_v63 }
 0x104   :  { %v2955_v61 = vpop.eup %2954 }
 0x105   :  { %v324_v34 = vmul.f32 %v2955_v61, %v2953_v60 }
 0x106   :  { %v2957_v62 = vpop.eup %2956 }
 0x107   :  { %v323_v32 = vmul.f32 0.0, %v2957_v62  ;;  %v2959_v36 = vpop.eup %2958 }
 0x109   :  { %v3327_v35 = vadd.f32 %v324_v34, %v323_v32 }
 0x10b   :  { %2960 = vtanh.f32 %v3327_v35 }
 0x118   :  { %v2961_v37 = vpop.eup %2960 }
 0x119   :  { %v327_v38 = vmul.f32 %v2961_v37, %v2959_v36 }
 0x11b   :  { %v329_v39 = vpack.c.bf16 %v327_v38, %v327_v38  ;;  %331 = vst [vmem:[%s3781_s2] sm:$0xff] %v327_v38 }
 0x11d   :  { %330 = vst [vmem:[#allocation2] sm:$0xf] %v329_v39 }
 0x124   :  { %v339_v40 = vld [vmem:[#allocation2] sm:$0xf] }
 0x125   :  { %565 = vmatmul.mubr.bf16.vlgmr.msra.gmra.mxu0 %v339_v40  ;;  %606 = vmatmul.mubr.bf16.vlgmr.msra.gmra.mxu1 %v339_v40 }
 0x126   :  { %849 = vmatpush1.bf16.msra.mxu0 %v3101_v2  ;;  %890 = vmatpush1.bf16.msra.mxu1 %v3129_v7 }
 0x127   :  { %850 = vmatprep.subr.bf16.mxu0 %v3107_v3  ;;  %891 = vmatprep.subr.bf16.mxu1 %v3148_v10 }
 0x128   :  { %880 = vmatprep.mubr.bf16.mxu0 %v3074_v1  ;;  %921 = vmatprep.mubr.bf16.mxu1 %v3074_v1 }
 0x12a   :  { %851 = vmatpush1.bf16.msra.mxu0 %v3113_v4  ;;  %892 = vmatpush1.bf16.msra.mxu1 %v3153_v11 }
 0x12b   :  { %852 = vmatprep.subr.bf16.mxu0 %v3119_v5  ;;  %893 = vmatprep.subr.bf16.mxu1 %v3170_v14 }
 0x12e   :  { %853 = vmatpush1.bf16.msra.mxu0 %v3135_v8  ;;  %894 = vmatpush1.bf16.msra.mxu1 %v3177_v15 }
 0x12f   :  { %854 = vmatprep.subr.bf16.mxu0 %v3142_v9  ;;  %895 = vmatprep.subr.bf16.mxu1 %v3183_v16 }
 0x132   :  { %855 = vmatpush1.bf16.msra.mxu0 %v3160_v12  ;;  %896 = vmatpush1.bf16.msra.mxu1 %v3201_v19 }
 0x133   :  { %856 = vmatprep.subr.bf16.mxu0 %v3165_v13  ;;  %897 = vmatprep.subr.bf16.mxu1 %v3207_v20 }
 0x136   :  { %857 = vmatpush1.bf16.msra.mxu0 %v3189_v17  ;;  %898 = vmatpush1.bf16.msra.mxu1 %v3225_v23 }
 0x137   :  { %858 = vmatprep.subr.bf16.mxu0 %v3195_v18  ;;  %899 = vmatprep.subr.bf16.mxu1 %v3236_v25 }
 0x13a   :  { %859 = vmatpush1.bf16.msra.mxu0 %v3212_v21  ;;  %900 = vmatpush1.bf16.msra.mxu1 %v3246_v27 }
 0x13b   :  { %860 = vmatprep.subr.bf16.mxu0 %v3218_v22  ;;  %901 = vmatprep.subr.bf16.mxu1 %v3252_v28 }
 0x13e   :  { %861 = vmatpush1.bf16.msra.mxu0 %v3230_v24  ;;  %902 = vmatpush1.bf16.msra.mxu1 %v3265_v30 }
 0x13f   :  { %862 = vmatprep.subr.bf16.mxu0 %v3241_v26  ;;  %903 = vmatprep.subr.bf16.mxu1 %v3271_v31 }
 0x142   :  { %863 = vmatpush1.bf16.msra.mxu0 %v3259_v29  ;;  %904 = vmatpush1.bf16.msra.mxu1 %v3281_v33 }
 0x143   :  { %1164 = vmatprep.subr.bf16.mxu0 %v3093_v0  ;;  %1205 = vmatprep.subr.bf16.mxu1 %v3124_v6  ;;  %v2584_v0 = vld [vmem:[%s3780_s0 + $0x18] sm:$0xff] }
 0x144   :  { %v337_v55 = vunpack.c.l.bf16 %v2584_v0  ;;  %v338_v57 = vunpack.c.h.bf16 %v2584_v0 }
 0x1e5   :  { %v566_v44 = vpop.f32.mrf.mxu0  ;;  %v607_v45 = vpop.f32.mrf.mxu1 }
 0x1e6   :  { %v614_v46 = vadd.f32 %v566_v44, %v335_v42  ;;  %v616_v56 = vadd.f32 %v607_v45, %v337_v55  ;;  %v3445_v55 = vld [vmem:[%s3779_s1 + $0xe8] ss:$16 sps:$4 sm:$0xff]  }
 0x1e7   :  { %v568_v47 = vpop.f32.mrf.mxu0  ;;  %v609_v48 = vpop.f32.mrf.mxu1 }
 0x1e8   :  { %v2617_v49 = vmul.f32 -1.442695, %v614_v46  ;;  %v615_v50 = vadd.f32 %v568_v47, %v336_v43  ;;  %v2619_v58 = vmul.f32 -1.442695, %v616_v56  ;;  %v617_v60 = vadd.f32 %v609_v48, %v338_v57  ;;  %v3454_v56 = vld [vmem:[%s3779_s1 + $0xc4] ss:$16 sps:$4 sm:$0xff]  }
 0x1e9   :  { %v570_v51 = vpop.f32.mrf.mxu0  ;;  %v611_v52 = vpop.f32.mrf.mxu1  ;;  %v3459_v57 = vld [vmem:[%s3779_s1 + $0xcc] ss:$16 sps:$4 sm:$0xff]  }
 0x1ea   :  { %2962 = vpow2.f32 %v2617_v49  ;;  %v2618_v6 = vmul.f32 -1.442695, %v615_v50 }
 0x1eb   :  { %v571_v53 = vpop.f32.mrf.mxu0  ;;  %v612_v54 = vpop.f32.mrf.mxu1 }
 0x1ec   :  { %2964 = vpow2.f32 %v2618_v6  ;;  %v3430_v6 = vld [vmem:[%s3779_s1 + $0xe4] ss:$16 sps:$4 sm:$0xff]   ;;  %v3435_v53 = vld [vmem:[%s3779_s1 + $0xec] ss:$16 sps:$4 sm:$0xff]   ;;  %v3440_v54 = vld [vmem:[%s3779_s1 + $0xe0] ss:$16 sps:$4 sm:$0xff]  }
 0x1ed   :  { %2966 = vpow2.f32 %v2619_v58  ;;  %v3464_v58 = vld [vmem:[%s3779_s1 + $0xc0] ss:$16 sps:$4 sm:$0xff]  }
 0x1f7   :  { %v2963_v59 = vpop.eup %2962 }
 0x1f8   :  { %v627_v61 = vadd.f32 1.0, %v2963_v59  ;;  %v3469_v59 = vld [vmem:[%s3779_s1 + $0xc8] ss:$16 sps:$4 sm:$0xff]  }
 0x1f9   :  { %v2965_v62 = vpop.eup %2964 }
 0x1fa   :  { %2968 = vrcp.f32 %v627_v61  ;;  %v628_v63 = vadd.f32 1.0, %v2965_v62  ;;  %v2967_v32 = vpop.eup %2966  ;;  %v3483_v61 = vld [vmem:[%s3779_s1 + $0xac] ss:$16 sps:$4 sm:$0xff]   ;;  %v3488_v62 = vld [vmem:[%s3779_s1 + $0xa0] ss:$16 sps:$4 sm:$0xff]  }
 0x1fb   :  { %2970 = vtanh.f32 %v617_v60  ;;  %v629_v38 = vadd.f32 1.0, %v2967_v32  ;;  %v3478_v60 = vld [vmem:[%s3779_s1 + $0xa4] ss:$16 sps:$4 sm:$0xff]  }
 0x1fc   :  { %2972 = vrcp.f32 %v628_v63  ;;  %v3493_v63 = vld [vmem:[%s3779_s1 + $0xa8] ss:$16 sps:$4 sm:$0xff]   ;;  %v3502_v32 = vld [vmem:[%s3779_s1 + $0x84] ss:$16 sps:$4 sm:$0xff]  }
 0x1fd   :  { %2974 = vrcp.f32 %v629_v38  ;;  %v3526_v38 = vld [vmem:[%s3779_s1 + $0x64] ss:$16 sps:$4 sm:$0xff]  }
 0x207   :  { %v2969_v34 = vpop.eup %2968 }
 0x208   :  { %v2971_v36 = vpop.eup %2970 }
 0x209   :  { %v2973_v37 = vpop.eup %2972  ;;  %v639_v40 = vmul.f32 %v2971_v36, %v2969_v34  ;;  %v3507_v34 = vld [vmem:[%s3779_s1 + $0x8c] ss:$16 sps:$4 sm:$0xff]   ;;  %v3512_v36 = vld [vmem:[%s3779_s1 + $0x80] ss:$16 sps:$4 sm:$0xff]  }
 0x20a   :  { %v638_v39 = vmul.f32 %v2973_v37, %v3327_v35  ;;  %v2975_v42 = vpop.eup %2974  ;;  %v3517_v37 = vld [vmem:[%s3779_s1 + $0x88] ss:$16 sps:$4 sm:$0xff]  }
 0x20c   :  { %v3374_v41 = vadd.f32 %v639_v40, %v638_v39  ;;  %v3531_v39 = vld [vmem:[%s3779_s1 + $0x6c] ss:$16 sps:$4 sm:$0xff]   ;;  %v3536_v40 = vld [vmem:[%s3779_s1 + $0x60] ss:$16 sps:$4 sm:$0xff]  }
 0x20e   :  { %2976 = vtanh.f32 %v3374_v41 }
 0x21b   :  { %v2977_v43 = vpop.eup %2976 }
 0x21c   :  { %v642_v44 = vmul.f32 %v2977_v43, %v2975_v42  ;;  %v3550_v42 = vld [vmem:[%s3779_s1 + $0x44] ss:$16 sps:$4 sm:$0xff]   ;;  %v3555_v43 = vld [vmem:[%s3779_s1 + $0x4c] ss:$16 sps:$4 sm:$0xff]  }
 0x21e   :  { %v644_v45 = vpack.c.bf16 %v642_v44, %v642_v44  ;;  %2620 = vst [vmem:[%s3781_s2 + $0x8] sm:$0xff] %v642_v44  ;;  %v3560_v44 = vld [vmem:[%s3779_s1 + $0x40] ss:$16 sps:$4 sm:$0xff]  }
 0x220   :  { %645 = vst [vmem:[#allocation2] sm:$0xf] %v644_v45  ;;  %v3565_v45 = vld [vmem:[%s3779_s1 + $0x48] ss:$16 sps:$4 sm:$0xff]  }
 0x227   :  { %v655_v46 = vld [vmem:[#allocation2] sm:$0xf] }
 0x228   :  { %881 = vmatmul.mubr.bf16.vlgmr.msra.gmra.mxu0 %v655_v46  ;;  %922 = vmatmul.mubr.bf16.vlgmr.msra.gmra.mxu1 %v655_v46  ;;  %v3574_v46 = vld [vmem:[%s3779_s1 + $0x20] ss:$16 sps:$4 sm:$0xff]  }
 0x229   :  { %1165 = vmatpush1.bf16.msra.mxu0 %v3101_v2  ;;  %1206 = vmatpush1.bf16.msra.mxu1 %v3129_v7  ;;  %v2621_v2 = vld [vmem:[%s3780_s0 + $0x20] sm:$0xff] }
 0x22a   :  { %1166 = vmatprep.subr.bf16.mxu0 %v3107_v3  ;;  %1207 = vmatprep.subr.bf16.mxu1 %v3148_v10  ;;  %v651_v3 = vunpack.c.l.bf16 %v2621_v2 }
 0x22b   :  { %1196 = vmatprep.mubr.bf16.mxu0 %v3074_v1  ;;  %1237 = vmatprep.mubr.bf16.mxu1 %v3074_v1 }
 0x22d   :  { %1167 = vmatpush1.bf16.msra.mxu0 %v3113_v4  ;;  %1208 = vmatpush1.bf16.msra.mxu1 %v3153_v11  ;;  %v652_v4 = vunpack.c.h.bf16 %v2621_v2  ;;  %v3579_v2 = vld [vmem:[%s3779_s1 + $0x24] ss:$16 sps:$4 sm:$0xff]  }
 0x22e   :  { %1168 = vmatprep.subr.bf16.mxu0 %v3119_v5  ;;  %1209 = vmatprep.subr.bf16.mxu1 %v3170_v14 }
 0x231   :  { %1169 = vmatpush1.bf16.msra.mxu0 %v3135_v8  ;;  %1210 = vmatpush1.bf16.msra.mxu1 %v3177_v15  ;;  %v2622_v15 = vld [vmem:[%s3780_s0 + $0x28] sm:$0xff] }
 0x232   :  { %1170 = vmatprep.subr.bf16.mxu0 %v3142_v9  ;;  %1211 = vmatprep.subr.bf16.mxu1 %v3183_v16 }
 0x235   :  { %1171 = vmatpush1.bf16.msra.mxu0 %v3160_v12  ;;  %1212 = vmatpush1.bf16.msra.mxu1 %v3201_v19  ;;  %v653_v19 = vunpack.c.l.bf16 %v2622_v15 }
 0x236   :  { %1172 = vmatprep.subr.bf16.mxu0 %v3165_v13  ;;  %1213 = vmatprep.subr.bf16.mxu1 %v3207_v20 }
 0x239   :  { %1173 = vmatpush1.bf16.msra.mxu0 %v3189_v17  ;;  %1214 = vmatpush1.bf16.msra.mxu1 %v3225_v23 }
 0x23a   :  { %1174 = vmatprep.subr.bf16.mxu0 %v3195_v18  ;;  %1215 = vmatprep.subr.bf16.mxu1 %v3236_v25 }
 0x23d   :  { %1175 = vmatpush1.bf16.msra.mxu0 %v3212_v21  ;;  %1216 = vmatpush1.bf16.msra.mxu1 %v3246_v27  ;;  %v654_v21 = vunpack.c.h.bf16 %v2622_v15 }
 0x23e   :  { %1176 = vmatprep.subr.bf16.mxu0 %v3218_v22  ;;  %1217 = vmatprep.subr.bf16.mxu1 %v3252_v28 }
 0x241   :  { %1177 = vmatpush1.bf16.msra.mxu0 %v3230_v24  ;;  %1218 = vmatpush1.bf16.msra.mxu1 %v3265_v30 }
 0x242   :  { %1178 = vmatprep.subr.bf16.mxu0 %v3241_v26  ;;  %1219 = vmatprep.subr.bf16.mxu1 %v3271_v31 }
 0x245   :  { %1179 = vmatpush1.bf16.msra.mxu0 %v3259_v29  ;;  %1220 = vmatpush1.bf16.msra.mxu1 %v3281_v33 }
 0x246   :  { %1480 = vmatprep.subr.bf16.mxu0 %v3430_v6  ;;  %1521 = vmatprep.subr.bf16.mxu1 %v3435_v53 }
 0x2e8   :  { %v882_v5 = vpop.f32.mrf.mxu0  ;;  %v923_v7 = vpop.f32.mrf.mxu1 }
 0x2e9   :  { %v930_v8 = vadd.f32 %v882_v5, %v651_v3  ;;  %v932_v20 = vadd.f32 %v923_v7, %v653_v19  ;;  %v3584_v3 = vld [vmem:[%s3779_s1 + $0x28] ss:$16 sps:$4 sm:$0xff]   ;;  %v3594_v5 = vld [vmem:[%s3779_s1 + $0x4] ss:$16 sps:$4 sm:$0xff]   ;;  %v3600_v7 = vld [vmem:[%s3779_s1 + $0xc] ss:$16 sps:$4 sm:$0xff]  }
 0x2ea   :  { %v884_v9 = vpop.f32.mrf.mxu0  ;;  %v925_v10 = vpop.f32.mrf.mxu1 }
 0x2eb   :  { %v2655_v11 = vmul.f32 -1.442695, %v930_v8  ;;  %v931_v12 = vadd.f32 %v884_v9, %v652_v4  ;;  %v2657_v22 = vmul.f32 -1.442695, %v932_v20  ;;  %v933_v24 = vadd.f32 %v925_v10, %v654_v21  ;;  %v3589_v4 = vld [vmem:[%s3779_s1 + $0x2c] ss:$16 sps:$4 sm:$0xff]  }
 0x2ec   :  { %v886_v13 = vpop.f32.mrf.mxu0  ;;  %v927_v14 = vpop.f32.mrf.mxu1  ;;  %v3608_v8 = vld [vmem:[%s3779_s1] ss:$16 sps:$4 sm:$0xff]   ;;  %v3613_v9 = vld [vmem:[%s3779_s1 + $0x8] ss:$16 sps:$4 sm:$0xff]  }
 0x2ed   :  { %2978 = vpow2.f32 %v2655_v11  ;;  %v2656_v16 = vmul.f32 -1.442695, %v931_v12  ;;  %v2659_v10 = vld [vmem:[%s3780_s0 + $0x30] sm:$0xff] }
 0x2ee   :  { %v887_v17 = vpop.f32.mrf.mxu0  ;;  %v928_v18 = vpop.f32.mrf.mxu1  ;;  %v967_v11 = vunpack.c.l.bf16 %v2659_v10  ;;  %v968_v12 = vunpack.c.h.bf16 %v2659_v10 }
 0x2ef   :  { %2980 = vpow2.f32 %v2656_v16 }
 0x2f0   :  { %2982 = vpow2.f32 %v2657_v22  ;;  %v2660_v22 = vld [vmem:[%s3780_s0 + $0x38] sm:$0xff] }
 0x2fa   :  { %v2979_v23 = vpop.eup %2978 }
 0x2fb   :  { %v943_v25 = vadd.f32 1.0, %v2979_v23 }
 0x2fc   :  { %v2981_v26 = vpop.eup %2980 }
 0x2fd   :  { %2984 = vrcp.f32 %v943_v25  ;;  %v944_v27 = vadd.f32 1.0, %v2981_v26  ;;  %v2983_v28 = vpop.eup %2982  ;;  %v969_v26 = vunpack.c.l.bf16 %v2660_v22 }
 0x2fe   :  { %2986 = vtanh.f32 %v933_v24  ;;  %v945_v33 = vadd.f32 1.0, %v2983_v28  ;;  %v970_v28 = vunpack.c.h.bf16 %v2660_v22 }
 0x2ff   :  { %2988 = vrcp.f32 %v944_v27 }
 0x300   :  { %2990 = vrcp.f32 %v945_v33 }
 0x30a   :  { %v2985_v29 = vpop.eup %2984 }
 0x30b   :  { %v2987_v30 = vpop.eup %2986 }
 0x30c   :  { %v2989_v31 = vpop.eup %2988  ;;  %v955_v47 = vmul.f32 %v2987_v30, %v2985_v29 }
 0x30d   :  { %v954_v35 = vmul.f32 %v2989_v31, %v3374_v41  ;;  %v2991_v49 = vpop.eup %2990  ;;  %v3541_v41 = vld [vmem:[%s3779_s1 + $0x68] ss:$16 sps:$4 sm:$0xff]  }
 0x30f   :  { %v3419_v48 = vadd.f32 %v955_v47, %v954_v35 }
 0x311   :  { %2992 = vtanh.f32 %v3419_v48 }
 0x31e   :  { %v2993_v50 = vpop.eup %2992 }
 0x31f   :  { %v958_v51 = vmul.f32 %v2993_v50, %v2991_v49 }
 0x321   :  { %v960_v52 = vpack.c.bf16 %v958_v51, %v958_v51  ;;  %2658 = vst [vmem:[%s3781_s2 + $0x10] sm:$0xff] %v958_v51 }
 0x323   :  { %961 = vst [vmem:[#allocation2] sm:$0xf] %v960_v52 }
 0x32a   :  { %v971_v0 = vld [vmem:[#allocation2] sm:$0xf] }
 0x32b   :  { %1197 = vmatmul.mubr.bf16.vlgmr.msra.gmra.mxu0 %v971_v0  ;;  %1238 = vmatmul.mubr.bf16.vlgmr.msra.gmra.mxu1 %v971_v0 }
 0x32c   :  { %1512 = vmatprep.mubr.bf16.mxu0 %v3074_v1  ;;  %1553 = vmatprep.mubr.bf16.mxu1 %v3074_v1 }
 0x32d   :  { %1481 = vmatpush1.bf16.msra.mxu0 %v3440_v54  ;;  %1522 = vmatpush1.bf16.msra.mxu1 %v3445_v55 }
 0x32e   :  { %1482 = vmatprep.subr.bf16.mxu0 %v3454_v56  ;;  %1523 = vmatprep.subr.bf16.mxu1 %v3459_v57 }
 0x331   :  { %1483 = vmatpush1.bf16.msra.mxu0 %v3464_v58  ;;  %1524 = vmatpush1.bf16.msra.mxu1 %v3469_v59 }
 0x332   :  { %1484 = vmatprep.subr.bf16.mxu0 %v3478_v60  ;;  %1525 = vmatprep.subr.bf16.mxu1 %v3483_v61 }
 0x335   :  { %1485 = vmatpush1.bf16.msra.mxu0 %v3488_v62  ;;  %1526 = vmatpush1.bf16.msra.mxu1 %v3493_v63 }
 0x336   :  { %1486 = vmatprep.subr.bf16.mxu0 %v3502_v32  ;;  %1527 = vmatprep.subr.bf16.mxu1 %v3507_v34 }
 0x339   :  { %1487 = vmatpush1.bf16.msra.mxu0 %v3512_v36  ;;  %1528 = vmatpush1.bf16.msra.mxu1 %v3517_v37 }
 0x33a   :  { %1488 = vmatprep.subr.bf16.mxu0 %v3526_v38  ;;  %1529 = vmatprep.subr.bf16.mxu1 %v3531_v39 }
 0x33d   :  { %1489 = vmatpush1.bf16.msra.mxu0 %v3536_v40  ;;  %1530 = vmatpush1.bf16.msra.mxu1 %v3541_v41 }
 0x33e   :  { %1490 = vmatprep.subr.bf16.mxu0 %v3550_v42  ;;  %1531 = vmatprep.subr.bf16.mxu1 %v3555_v43 }
 0x341   :  { %1491 = vmatpush1.bf16.msra.mxu0 %v3560_v44  ;;  %1532 = vmatpush1.bf16.msra.mxu1 %v3565_v45 }
 0x342   :  { %1492 = vmatprep.subr.bf16.mxu0 %v3579_v2  ;;  %1533 = vmatprep.subr.bf16.mxu1 %v3589_v4 }
 0x345   :  { %1493 = vmatpush1.bf16.msra.mxu0 %v3574_v46  ;;  %1534 = vmatpush1.bf16.msra.mxu1 %v3584_v3 }
 0x346   :  { %1494 = vmatprep.subr.bf16.mxu0 %v3594_v5  ;;  %1535 = vmatprep.subr.bf16.mxu1 %v3600_v7 }
 0x349   :  { %1495 = vmatpush1.bf16.msra.mxu0 %v3608_v8  ;;  %1536 = vmatpush1.bf16.msra.mxu1 %v3613_v9 }
 0x34a   :  { %1796 = vmatprep.subr.bf16.mxu0 %v3430_v6  ;;  %1837 = vmatprep.subr.bf16.mxu1 %v3435_v53 }
 0x3eb   :  { %v1198_v13 = vpop.f32.mrf.mxu0  ;;  %v1239_v14 = vpop.f32.mrf.mxu1 }
 0x3ec   :  { %v1246_v15 = vadd.f32 %v1198_v13, %v967_v11  ;;  %v1248_v27 = vadd.f32 %v1239_v14, %v969_v26 }
 0x3ed   :  { %v1200_v16 = vpop.f32.mrf.mxu0  ;;  %v1241_v17 = vpop.f32.mrf.mxu1 }
 0x3ee   :  { %v2693_v18 = vmul.f32 -1.442695, %v1246_v15  ;;  %v1247_v19 = vadd.f32 %v1200_v16, %v968_v12  ;;  %v2695_v29 = vmul.f32 -1.442695, %v1248_v27  ;;  %v1249_v31 = vadd.f32 %v1241_v17, %v970_v28 }
 0x3ef   :  { %v1202_v20 = vpop.f32.mrf.mxu0  ;;  %v1243_v21 = vpop.f32.mrf.mxu1 }
 0x3f0   :  { %2994 = vpow2.f32 %v2693_v18  ;;  %v2694_v23 = vmul.f32 -1.442695, %v1247_v19 }
 0x3f1   :  { %v1203_v24 = vpop.f32.mrf.mxu0  ;;  %v1244_v25 = vpop.f32.mrf.mxu1 }
 0x3f2   :  { %2996 = vpow2.f32 %v2694_v23 }
 0x3f3   :  { %2998 = vpow2.f32 %v2695_v29  ;;  %v2698_v29 = vld [vmem:[%s3780_s0 + $0x48] sm:$0xff] }
 0x3fd   :  { %v2995_v30 = vpop.eup %2994 }
 0x3fe   :  { %v1259_v33 = vadd.f32 1.0, %v2995_v30 }
 0x3ff   :  { %v2997_v35 = vpop.eup %2996 }
 0x400   :  { %3000 = vrcp.f32 %v1259_v33  ;;  %v1260_v47 = vadd.f32 1.0, %v2997_v35  ;;  %v2999_v49 = vpop.eup %2998  ;;  %v1285_v35 = vunpack.c.l.bf16 %v2698_v29 }
 0x401   :  { %3002 = vtanh.f32 %v1249_v31  ;;  %v1261_v0 = vadd.f32 1.0, %v2999_v49  ;;  %v1286_v49 = vunpack.c.h.bf16 %v2698_v29 }
 0x402   :  { %3004 = vrcp.f32 %v1260_v47 }
 0x403   :  { %3006 = vrcp.f32 %v1261_v0 }
 0x40d   :  { %v3001_v50 = vpop.eup %3000 }
 0x40e   :  { %v3003_v51 = vpop.eup %3002 }
 0x40f   :  { %v3005_v52 = vpop.eup %3004  ;;  %v1271_v11 = vmul.f32 %v3003_v51, %v3001_v50 }
 0x410   :  { %v1270_v10 = vmul.f32 %v3005_v52, %v3419_v48  ;;  %v3007_v13 = vpop.eup %3006  ;;  %v2697_v48 = vld [vmem:[%s3780_s0 + $0x40] sm:$0xff] }
 0x411   :  { %v1283_v18 = vunpack.c.l.bf16 %v2697_v48  ;;  %v1284_v19 = vunpack.c.h.bf16 %v2697_v48 }
 0x412   :  { %v3628_v12 = vadd.f32 %v1271_v11, %v1270_v10 }
 0x414   :  { %3008 = vtanh.f32 %v3628_v12 }
 0x421   :  { %v3009_v14 = vpop.eup %3008 }
 0x422   :  { %v1274_v15 = vmul.f32 %v3009_v14, %v3007_v13 }
 0x424   :  { %v1276_v16 = vpack.c.bf16 %v1274_v15, %v1274_v15  ;;  %2696 = vst [vmem:[%s3781_s2 + $0x18] sm:$0xff] %v1274_v15 }
 0x426   :  { %1277 = vst [vmem:[#allocation2] sm:$0xf] %v1276_v16 }
 0x42d   :  { %v1287_v17 = vld [vmem:[#allocation2] sm:$0xf] }
 0x42e   :  { %1513 = vmatmul.mubr.bf16.vlgmr.msra.gmra.mxu0 %v1287_v17  ;;  %1554 = vmatmul.mubr.bf16.vlgmr.msra.gmra.mxu1 %v1287_v17 }
 0x42f   :  { %1797 = vmatpush1.bf16.msra.mxu0 %v3440_v54  ;;  %1838 = vmatpush1.bf16.msra.mxu1 %v3445_v55 }
 0x430   :  { %1798 = vmatprep.subr.bf16.mxu0 %v3454_v56  ;;  %1839 = vmatprep.subr.bf16.mxu1 %v3459_v57 }
 0x431   :  { %1828 = vmatprep.mubr.bf16.mxu0 %v3074_v1  ;;  %1869 = vmatprep.mubr.bf16.mxu1 %v3074_v1 }
 0x433   :  { %1799 = vmatpush1.bf16.msra.mxu0 %v3464_v58  ;;  %1840 = vmatpush1.bf16.msra.mxu1 %v3469_v59 }
 0x434   :  { %1800 = vmatprep.subr.bf16.mxu0 %v3478_v60  ;;  %1841 = vmatprep.subr.bf16.mxu1 %v3483_v61 }
 0x437   :  { %1801 = vmatpush1.bf16.msra.mxu0 %v3488_v62  ;;  %1842 = vmatpush1.bf16.msra.mxu1 %v3493_v63 }
 0x438   :  { %1802 = vmatprep.subr.bf16.mxu0 %v3502_v32  ;;  %1843 = vmatprep.subr.bf16.mxu1 %v3507_v34 }
 0x43b   :  { %1803 = vmatpush1.bf16.msra.mxu0 %v3512_v36  ;;  %1844 = vmatpush1.bf16.msra.mxu1 %v3517_v37 }
 0x43c   :  { %1804 = vmatprep.subr.bf16.mxu0 %v3526_v38  ;;  %1845 = vmatprep.subr.bf16.mxu1 %v3531_v39 }
 0x43f   :  { %1805 = vmatpush1.bf16.msra.mxu0 %v3536_v40  ;;  %1846 = vmatpush1.bf16.msra.mxu1 %v3541_v41 }
 0x440   :  { %1806 = vmatprep.subr.bf16.mxu0 %v3550_v42  ;;  %1847 = vmatprep.subr.bf16.mxu1 %v3555_v43 }
 0x443   :  { %1807 = vmatpush1.bf16.msra.mxu0 %v3560_v44  ;;  %1848 = vmatpush1.bf16.msra.mxu1 %v3565_v45 }
 0x444   :  { %1808 = vmatprep.subr.bf16.mxu0 %v3579_v2  ;;  %1849 = vmatprep.subr.bf16.mxu1 %v3589_v4 }
 0x447   :  { %1809 = vmatpush1.bf16.msra.mxu0 %v3574_v46  ;;  %1850 = vmatpush1.bf16.msra.mxu1 %v3584_v3 }
 0x448   :  { %1810 = vmatprep.subr.bf16.mxu0 %v3594_v5  ;;  %1851 = vmatprep.subr.bf16.mxu1 %v3600_v7 }
 0x44b   :  { %1811 = vmatpush1.bf16.msra.mxu0 %v3608_v8  ;;  %1852 = vmatpush1.bf16.msra.mxu1 %v3613_v9 }
 0x44c   :  { %2112 = vmatprep.subr.bf16.mxu0 %v3430_v6  ;;  %2153 = vmatprep.subr.bf16.mxu1 %v3435_v53 }
 0x4ee   :  { %v1514_v20 = vpop.f32.mrf.mxu0  ;;  %v1555_v21 = vpop.f32.mrf.mxu1 }
 0x4ef   :  { %v1562_v22 = vadd.f32 %v1514_v20, %v1283_v18  ;;  %v1564_v47 = vadd.f32 %v1555_v21, %v1285_v35 }
 0x4f0   :  { %v1516_v23 = vpop.f32.mrf.mxu0  ;;  %v1557_v24 = vpop.f32.mrf.mxu1 }
 0x4f1   :  { %v2731_v25 = vmul.f32 -1.442695, %v1562_v22  ;;  %v1563_v26 = vadd.f32 %v1516_v23, %v1284_v19  ;;  %v2733_v50 = vmul.f32 -1.442695, %v1564_v47  ;;  %v1565_v52 = vadd.f32 %v1557_v24, %v1286_v49 }
 0x4f2   :  { %v1518_v27 = vpop.f32.mrf.mxu0  ;;  %v1559_v28 = vpop.f32.mrf.mxu1 }
 0x4f3   :  { %3010 = vpow2.f32 %v2731_v25  ;;  %v2732_v30 = vmul.f32 -1.442695, %v1563_v26 }
 0x4f4   :  { %v1519_v31 = vpop.f32.mrf.mxu0  ;;  %v1560_v33 = vpop.f32.mrf.mxu1 }
 0x4f5   :  { %3012 = vpow2.f32 %v2732_v30 }
 0x4f6   :  { %3014 = vpow2.f32 %v2733_v50 }
 0x500   :  { %v3011_v51 = vpop.eup %3010 }
 0x501   :  { %v1575_v0 = vadd.f32 1.0, %v3011_v51 }
 0x502   :  { %v3013_v10 = vpop.eup %3012 }
 0x503   :  { %3016 = vrcp.f32 %v1575_v0  ;;  %v1576_v11 = vadd.f32 1.0, %v3013_v10  ;;  %v3015_v13 = vpop.eup %3014 }
 0x504   :  { %3018 = vtanh.f32 %v1565_v52  ;;  %v1577_v17 = vadd.f32 1.0, %v3015_v13 }
 0x505   :  { %3020 = vrcp.f32 %v1576_v11 }
 0x506   :  { %3022 = vrcp.f32 %v1577_v17 }
 0x510   :  { %v3017_v14 = vpop.eup %3016 }
 0x511   :  { %v3019_v15 = vpop.eup %3018 }
 0x512   :  { %v3021_v16 = vpop.eup %3020  ;;  %v1587_v18 = vmul.f32 %v3019_v15, %v3017_v14 }
 0x513   :  { %v1586_v48 = vmul.f32 %v3021_v16, %v3628_v12  ;;  %v3023_v20 = vpop.eup %3022  ;;  %v2735_v12 = vld [vmem:[%s3780_s0 + $0x50] sm:$0xff] }
 0x514   :  { %v1599_v25 = vunpack.c.l.bf16 %v2735_v12  ;;  %v1600_v26 = vunpack.c.h.bf16 %v2735_v12 }
 0x515   :  { %v3675_v19 = vadd.f32 %v1587_v18, %v1586_v48 }
 0x517   :  { %3024 = vtanh.f32 %v3675_v19 }
 0x524   :  { %v3025_v21 = vpop.eup %3024 }
 0x525   :  { %v1590_v22 = vmul.f32 %v3025_v21, %v3023_v20 }
 0x527   :  { %v1592_v23 = vpack.c.bf16 %v1590_v22, %v1590_v22  ;;  %2734 = vst [vmem:[%s3781_s2 + $0x20] sm:$0xff] %v1590_v22 }
 0x529   :  { %1593 = vst [vmem:[#allocation2] sm:$0xf] %v1592_v23 }
 0x530   :  { %v1603_v24 = vld [vmem:[#allocation2] sm:$0xf] }
 0x531   :  { %1829 = vmatmul.mubr.bf16.vlgmr.msra.gmra.mxu0 %v1603_v24  ;;  %1870 = vmatmul.mubr.bf16.vlgmr.msra.gmra.mxu1 %v1603_v24 }
 0x532   :  { %2113 = vmatpush1.bf16.msra.mxu0 %v3440_v54  ;;  %2154 = vmatpush1.bf16.msra.mxu1 %v3445_v55 }
 0x533   :  { %2114 = vmatprep.subr.bf16.mxu0 %v3454_v56  ;;  %2155 = vmatprep.subr.bf16.mxu1 %v3459_v57 }
 0x534   :  { %2144 = vmatprep.mubr.bf16.mxu0 %v3074_v1  ;;  %2185 = vmatprep.mubr.bf16.mxu1 %v3074_v1 }
 0x536   :  { %2115 = vmatpush1.bf16.msra.mxu0 %v3464_v58  ;;  %2156 = vmatpush1.bf16.msra.mxu1 %v3469_v59 }
 0x537   :  { %2116 = vmatprep.subr.bf16.mxu0 %v3478_v60  ;;  %2157 = vmatprep.subr.bf16.mxu1 %v3483_v61 }
 0x53a   :  { %2117 = vmatpush1.bf16.msra.mxu0 %v3488_v62  ;;  %2158 = vmatpush1.bf16.msra.mxu1 %v3493_v63 }
 0x53b   :  { %2118 = vmatprep.subr.bf16.mxu0 %v3502_v32  ;;  %2159 = vmatprep.subr.bf16.mxu1 %v3507_v34 }
 0x53e   :  { %2119 = vmatpush1.bf16.msra.mxu0 %v3512_v36  ;;  %2160 = vmatpush1.bf16.msra.mxu1 %v3517_v37 }
 0x53f   :  { %2120 = vmatprep.subr.bf16.mxu0 %v3526_v38  ;;  %2161 = vmatprep.subr.bf16.mxu1 %v3531_v39 }
 0x542   :  { %2121 = vmatpush1.bf16.msra.mxu0 %v3536_v40  ;;  %2162 = vmatpush1.bf16.msra.mxu1 %v3541_v41 }
 0x543   :  { %2122 = vmatprep.subr.bf16.mxu0 %v3550_v42  ;;  %2163 = vmatprep.subr.bf16.mxu1 %v3555_v43 }
 0x546   :  { %2123 = vmatpush1.bf16.msra.mxu0 %v3560_v44  ;;  %2164 = vmatpush1.bf16.msra.mxu1 %v3565_v45 }
 0x547   :  { %2124 = vmatprep.subr.bf16.mxu0 %v3579_v2  ;;  %2165 = vmatprep.subr.bf16.mxu1 %v3589_v4 }
 0x54a   :  { %2125 = vmatpush1.bf16.msra.mxu0 %v3574_v46  ;;  %2166 = vmatpush1.bf16.msra.mxu1 %v3584_v3 }
 0x54b   :  { %2126 = vmatprep.subr.bf16.mxu0 %v3594_v5  ;;  %2167 = vmatprep.subr.bf16.mxu1 %v3600_v7 }
 0x54e   :  { %2127 = vmatpush1.bf16.msra.mxu0 %v3608_v8  ;;  %2168 = vmatpush1.bf16.msra.mxu1 %v3613_v9 }
 0x54f   :  { %2428 = vmatprep.subr.bf16.mxu0 %v3430_v6  ;;  %2469 = vmatprep.subr.bf16.mxu1 %v3435_v53  ;;  %v2736_v6 = vld [vmem:[%s3780_s0 + $0x58] sm:$0xff] }
 0x550   :  { %v1601_v52 = vunpack.c.l.bf16 %v2736_v6  ;;  %v1602_v10 = vunpack.c.h.bf16 %v2736_v6  ;;  %v2811_v6 = vld [vmem:[%s3780_s0 + $0x70] sm:$0xff] }
 0x5f1   :  { %v1830_v27 = vpop.f32.mrf.mxu0  ;;  %v1871_v28 = vpop.f32.mrf.mxu1 }
 0x5f2   :  { %v1878_v29 = vadd.f32 %v1830_v27, %v1599_v25  ;;  %v1880_v0 = vadd.f32 %v1871_v28, %v1601_v52 }
 0x5f3   :  { %v1832_v30 = vpop.f32.mrf.mxu0  ;;  %v1873_v31 = vpop.f32.mrf.mxu1 }
 0x5f4   :  { %v2769_v33 = vmul.f32 -1.442695, %v1878_v29  ;;  %v1879_v35 = vadd.f32 %v1832_v30, %v1600_v26  ;;  %v2771_v11 = vmul.f32 -1.442695, %v1880_v0  ;;  %v1881_v14 = vadd.f32 %v1873_v31, %v1602_v10 }
 0x5f5   :  { %v1834_v47 = vpop.f32.mrf.mxu0  ;;  %v1875_v49 = vpop.f32.mrf.mxu1 }
 0x5f6   :  { %3026 = vpow2.f32 %v2769_v33  ;;  %v2770_v53 = vmul.f32 -1.442695, %v1879_v35 }
 0x5f7   :  { %v1835_v50 = vpop.f32.mrf.mxu0  ;;  %v1876_v51 = vpop.f32.mrf.mxu1 }
 0x5f8   :  { %3028 = vpow2.f32 %v2770_v53  ;;  %v2231_v53 = vunpack.c.l.bf16 %v2811_v6  ;;  %v2232_v50 = vunpack.c.h.bf16 %v2811_v6 }
 0x5f9   :  { %3030 = vpow2.f32 %v2771_v11 }
 0x603   :  { %v3027_v13 = vpop.eup %3026 }
 0x604   :  { %v1891_v15 = vadd.f32 1.0, %v3027_v13 }
 0x605   :  { %v3029_v16 = vpop.eup %3028 }
 0x606   :  { %3032 = vrcp.f32 %v1891_v15  ;;  %v1892_v17 = vadd.f32 1.0, %v3029_v16  ;;  %v3031_v48 = vpop.eup %3030 }
 0x607   :  { %3034 = vtanh.f32 %v1881_v14  ;;  %v1893_v22 = vadd.f32 1.0, %v3031_v48 }
 0x608   :  { %3036 = vrcp.f32 %v1892_v17  ;;  %v2812_v17 = vld [vmem:[%s3780_s0 + $0x78] sm:$0xff] }
 0x609   :  { %3038 = vrcp.f32 %v1893_v22 }
 0x613   :  { %v3033_v18 = vpop.eup %3032 }
 0x614   :  { %v3035_v20 = vpop.eup %3034 }
 0x615   :  { %v3037_v21 = vpop.eup %3036  ;;  %v1903_v24 = vmul.f32 %v3035_v20, %v3033_v18 }
 0x616   :  { %v1902_v23 = vmul.f32 %v3037_v21, %v3675_v19  ;;  %v3039_v25 = vpop.eup %3038  ;;  %v2233_v21 = vunpack.c.l.bf16 %v2812_v17 }
 0x618   :  { %v3722_v12 = vadd.f32 %v1903_v24, %v1902_v23  ;;  %v2234_v23 = vunpack.c.h.bf16 %v2812_v17 }
 0x61a   :  { %3040 = vtanh.f32 %v3722_v12 }
 0x627   :  { %v3041_v26 = vpop.eup %3040 }
 0x628   :  { %v1906_v27 = vmul.f32 %v3041_v26, %v3039_v25 }
 0x62a   :  { %v1908_v28 = vpack.c.bf16 %v1906_v27, %v1906_v27  ;;  %2772 = vst [vmem:[%s3781_s2 + $0x28] sm:$0xff] %v1906_v27 }
 0x62c   :  { %1909 = vst [vmem:[#allocation2] sm:$0xf] %v1908_v28 }
 0x633   :  { %v1919_v29 = vld [vmem:[#allocation2] sm:$0xf] }
 0x634   :  { %2145 = vmatmul.mubr.bf16.vlgmr.msra.gmra.mxu0 %v1919_v29  ;;  %2186 = vmatmul.mubr.bf16.vlgmr.msra.gmra.mxu1 %v1919_v29 }
 0x635   :  { %2429 = vmatpush1.bf16.msra.mxu0 %v3440_v54  ;;  %2470 = vmatpush1.bf16.msra.mxu1 %v3445_v55 }
 0x636   :  { %2430 = vmatprep.subr.bf16.mxu0 %v3454_v56  ;;  %2471 = vmatprep.subr.bf16.mxu1 %v3459_v57 }
 0x637   :  { %2460 = vmatprep.mubr.bf16.mxu0 %v3074_v1  ;;  %2501 = vmatprep.mubr.bf16.mxu1 %v3074_v1  ;;  %v2773_v1 = vld [vmem:[%s3780_s0 + $0x60] sm:$0xff] }
 0x638   :  { %v1915_v54 = vunpack.c.l.bf16 %v2773_v1  ;;  %v1916_v55 = vunpack.c.h.bf16 %v2773_v1 }
 0x639   :  { %2431 = vmatpush1.bf16.msra.mxu0 %v3464_v58  ;;  %2472 = vmatpush1.bf16.msra.mxu1 %v3469_v59 }
 0x63a   :  { %2432 = vmatprep.subr.bf16.mxu0 %v3478_v60  ;;  %2473 = vmatprep.subr.bf16.mxu1 %v3483_v61 }
 0x63d   :  { %2433 = vmatpush1.bf16.msra.mxu0 %v3488_v62  ;;  %2474 = vmatpush1.bf16.msra.mxu1 %v3493_v63 }
 0x63e   :  { %2434 = vmatprep.subr.bf16.mxu0 %v3502_v32  ;;  %2475 = vmatprep.subr.bf16.mxu1 %v3507_v34  ;;  %v2774_v34 = vld [vmem:[%s3780_s0 + $0x68] sm:$0xff] }
 0x641   :  { %2435 = vmatpush1.bf16.msra.mxu0 %v3512_v36  ;;  %2476 = vmatpush1.bf16.msra.mxu1 %v3517_v37 }
 0x642   :  { %2436 = vmatprep.subr.bf16.mxu0 %v3526_v38  ;;  %2477 = vmatprep.subr.bf16.mxu1 %v3531_v39  ;;  %v1917_v39 = vunpack.c.l.bf16 %v2774_v34 }
 0x645   :  { %2437 = vmatpush1.bf16.msra.mxu0 %v3536_v40  ;;  %2478 = vmatpush1.bf16.msra.mxu1 %v3541_v41  ;;  %v1918_v41 = vunpack.c.h.bf16 %v2774_v34 }
 0x646   :  { %2438 = vmatprep.subr.bf16.mxu0 %v3550_v42  ;;  %2479 = vmatprep.subr.bf16.mxu1 %v3555_v43 }
 0x649   :  { %2439 = vmatpush1.bf16.msra.mxu0 %v3560_v44  ;;  %2480 = vmatpush1.bf16.msra.mxu1 %v3565_v45 }
 0x64a   :  { %2440 = vmatprep.subr.bf16.mxu0 %v3579_v2  ;;  %2481 = vmatprep.subr.bf16.mxu1 %v3589_v4 }
 0x64d   :  { %2441 = vmatpush1.bf16.msra.mxu0 %v3574_v46  ;;  %2482 = vmatpush1.bf16.msra.mxu1 %v3584_v3 }
 0x64e   :  { %2442 = vmatprep.subr.bf16.mxu0 %v3594_v5  ;;  %2483 = vmatprep.subr.bf16.mxu1 %v3600_v7 }
 0x651   :  { %2443 = vmatpush1.bf16.msra.mxu0 %v3608_v8  ;;  %2484 = vmatpush1.bf16.msra.mxu1 %v3613_v9 }
 0x6f4   :  { %v2146_v56 = vpop.f32.mrf.mxu0  ;;  %v2187_v57 = vpop.f32.mrf.mxu1 }
 0x6f5   :  { %v2194_v58 = vadd.f32 %v2146_v56, %v1915_v54  ;;  %v2196_v40 = vadd.f32 %v2187_v57, %v1917_v39 }
 0x6f6   :  { %v2148_v59 = vpop.f32.mrf.mxu0  ;;  %v2189_v60 = vpop.f32.mrf.mxu1 }
 0x6f7   :  { %v2807_v61 = vmul.f32 -1.442695, %v2194_v58  ;;  %v2195_v62 = vadd.f32 %v2148_v59, %v1916_v55  ;;  %v2809_v42 = vmul.f32 -1.442695, %v2196_v40  ;;  %v2197_v44 = vadd.f32 %v2189_v60, %v1918_v41 }
 0x6f8   :  { %v2150_v63 = vpop.f32.mrf.mxu0  ;;  %v2191_v32 = vpop.f32.mrf.mxu1 }
 0x6f9   :  { %3042 = vpow2.f32 %v2807_v61  ;;  %v2808_v36 = vmul.f32 -1.442695, %v2195_v62 }
 0x6fa   :  { %v2151_v37 = vpop.f32.mrf.mxu0  ;;  %v2192_v38 = vpop.f32.mrf.mxu1 }
 0x6fb   :  { %3044 = vpow2.f32 %v2808_v36 }
 0x6fc   :  { %3046 = vpow2.f32 %v2809_v42 }
 0x706   :  { %v3043_v43 = vpop.eup %3042 }
 0x707   :  { %v2207_v45 = vadd.f32 1.0, %v3043_v43 }
 0x708   :  { %v3045_v46 = vpop.eup %3044 }
 0x709   :  { %3048 = vrcp.f32 %v2207_v45  ;;  %v2208_v2 = vadd.f32 1.0, %v3045_v46  ;;  %v3047_v3 = vpop.eup %3046 }
 0x70a   :  { %3050 = vtanh.f32 %v2197_v44  ;;  %v2209_v8 = vadd.f32 1.0, %v3047_v3 }
 0x70b   :  { %3052 = vrcp.f32 %v2208_v2 }
 0x70c   :  { %3054 = vrcp.f32 %v2209_v8 }
 0x716   :  { %v3049_v4 = vpop.eup %3048 }
 0x717   :  { %v3051_v5 = vpop.eup %3050 }
 0x718   :  { %v3053_v7 = vpop.eup %3052  ;;  %v2219_v19 = vmul.f32 %v3051_v5, %v3049_v4 }
 0x719   :  { %v2218_v9 = vmul.f32 %v3053_v7, %v3722_v12  ;;  %v3055_v31 = vpop.eup %3054 }
 0x71b   :  { %v2220_v30 = vadd.f32 %v2219_v19, %v2218_v9 }
 0x71d   :  { %3056 = vtanh.f32 %v2220_v30 }
 0x72a   :  { %v3057_v33 = vpop.eup %3056 }
 0x72b   :  { %v2222_v35 = vmul.f32 %v3057_v33, %v3055_v31 }
 0x72d   :  { %v2224_v47 = vpack.c.bf16 %v2222_v35, %v2222_v35  ;;  %2810 = vst [vmem:[%s3781_s2 + $0x30] sm:$0xff] %v2222_v35 }
 0x72f   :  { %2225 = vst [vmem:[#allocation2] sm:$0xf] %v2224_v47 }
 0x736   :  { %v2235_v49 = vld [vmem:[#allocation2] sm:$0xf] }
 0x737   :  { %2461 = vmatmul.mubr.bf16.vlgmr.msra.gmra.mxu0 %v2235_v49  ;;  %2502 = vmatmul.mubr.bf16.vlgmr.msra.gmra.mxu1 %v2235_v49 }
 0x7f7   :  { %v2462_v51 = vpop.f32.mrf.mxu0  ;;  %v2503_v52 = vpop.f32.mrf.mxu1 }
 0x7f8   :  { %v2510_v0 = vadd.f32 %v2462_v51, %v2231_v53  ;;  %v2512_v22 = vadd.f32 %v2503_v52, %v2233_v21 }
 0x7f9   :  { %v2464_v10 = vpop.f32.mrf.mxu0  ;;  %v2505_v11 = vpop.f32.mrf.mxu1 }
 0x7fa   :  { %v2845_v13 = vmul.f32 -1.442695, %v2510_v0  ;;  %v2511_v14 = vadd.f32 %v2464_v10, %v2232_v50  ;;  %v2847_v24 = vmul.f32 -1.442695, %v2512_v22  ;;  %v2513_v25 = vadd.f32 %v2505_v11, %v2234_v23 }
 0x7fb   :  { %v2466_v15 = vpop.f32.mrf.mxu0  ;;  %v2507_v16 = vpop.f32.mrf.mxu1 }
 0x7fc   :  { %3058 = vpow2.f32 %v2845_v13  ;;  %v2846_v48 = vmul.f32 -1.442695, %v2511_v14 }
 0x7fd   :  { %v2467_v18 = vpop.f32.mrf.mxu0  ;;  %v2508_v20 = vpop.f32.mrf.mxu1 }
 0x7fe   :  { %3060 = vpow2.f32 %v2846_v48 }
 0x7ff   :  { %3062 = vpow2.f32 %v2847_v24 }
 0x809   :  { %v3059_v12 = vpop.eup %3058 }
 0x80a   :  { %v2523_v26 = vadd.f32 1.0, %v3059_v12 }
 0x80b   :  { %v3061_v27 = vpop.eup %3060 }
 0x80c   :  { %3064 = vrcp.f32 %v2523_v26  ;;  %v2524_v28 = vadd.f32 1.0, %v3061_v27  ;;  %v3063_v29 = vpop.eup %3062 }
 0x80d   :  { %3066 = vtanh.f32 %v2513_v25  ;;  %v2525_v56 = vadd.f32 1.0, %v3063_v29 }
 0x80e   :  { %3068 = vrcp.f32 %v2524_v28 }
 0x80f   :  { %3070 = vrcp.f32 %v2525_v56 }
 0x819   :  { %v3065_v1 = vpop.eup %3064 }
 0x81a   :  { %v3067_v54 = vpop.eup %3066 }
 0x81b   :  { %v3069_v55 = vpop.eup %3068  ;;  %v2535_v58 = vmul.f32 %v3067_v54, %v3065_v1 }
 0x81c   :  { %v2534_v57 = vmul.f32 %v3069_v55, %v2220_v30  ;;  %v3071_v60 = vpop.eup %3070 }
 0x81e   :  { %v2536_v59 = vadd.f32 %v2535_v58, %v2534_v57 }
 0x820   :  { %3072 = vtanh.f32 %v2536_v59 }
 0x82d   :  { %v3073_v61 = vpop.eup %3072 }
 0x82e   :  { %v2538_v62 = vmul.f32 %v3073_v61, %v3071_v60 }
 0x830   :  { %v2540_v63 = vpack.c.bf16 %v2538_v62, %v2538_v62  ;;  %2848 = vst [vmem:[%s3781_s2 + $0x38] sm:$0xff] %v2538_v62 }
 0x832   :  { %2541 = vst [vmem:[#allocation2] sm:$0xf] %v2540_v63 }

</bundles_post_ra>
